<compile_context>
chip_gen: v7x
topology: tpu7x:2x2x1
jax: 0.10.0
libtpu: 0.0.40
codegen_flags: <defaults>
</compile_context>

<pallas_src>
import jax
import jax.numpy as jnp
from jax.experimental import pallas as pl
from jax.experimental.pallas import tpu as pltpu

C1, C2, HID = 16, 32, 64    # conv1/conv2 channels, fc1 width (fixed by the module)
HIDP = 128                  # fc1 width zero-padded to a full 128-lane vreg


# ----------------------------------------------------------------------------
# Fused kernel: conv1 -> relu -> conv2 -> relu -> fc1 -> relu -> fc3
# One grid step = TB samples; all activations stay in VMEM/vregs.
# ----------------------------------------------------------------------------
def _valcnn_kernel(x_ref, m1_ref, b1_ref, m2_ref, b2_ref,
                   wf1_ref, bf1_ref, w3_ref, b3_ref, o_ref,
                   a1p_ref, acc_ref):
    S = wf1_ref.shape[0]          # spatial size
    TB = x_ref.shape[1]           # samples per grid step
    WP1 = a1p_ref.shape[2]        # (S + 2) * C1
    f32 = jnp.float32

    # Zero the two H-padding rows of the conv1-activation scratch and the fc1
    # accumulator.  Done every step (cheap vs. matmul traffic) so the kernel
    # stays correct when the "parallel" batch axis is split across TensorCores.
    zrow = jnp.zeros((TB, WP1), f32)
    a1p_ref[0] = zrow
    a1p_ref[S + 1] = zrow
    acc_ref[...] = jnp.zeros_like(acc_ref)

    # conv1 + bias + ReLU.  One fused-3-tap (TB, 3S) @ (3S, WP1) matmul per
    # output row h.  The result is the W-padded conv1 activation for that row:
    # zero weight columns / zero bias keep the pad lanes at exactly 0 through
    # ReLU, which conv2's banded weights then rely on.
    @pl.loop(0, S)
    def conv1_row(h):
        a1 = jnp.dot(x_ref[h], m1_ref[...], preferred_element_type=f32)
        a1p_ref[h + 1] = jnp.maximum(a1 + b1_ref[...], 0.0)

    # conv2 + bias + ReLU fused with the fc1 contraction of that output row:
    #   a2_h  = relu(sum_tap a1p[h+tap] @ m2[tap] + b2)   (TB, S*C2)
    #   acc  += a2_h @ wf1[h]                              (TB, HIDP)
    @pl.loop(0, S)
    def conv2_fc1_row(h):
        t = jnp.dot(a1p_ref[h], m2_ref[0], preferred_element_type=f32)
        t = t + jnp.dot(a1p_ref[h + 1], m2_ref[1], preferred_element_type=f32)
        t = t + jnp.dot(a1p_ref[h + 2], m2_ref[2], preferred_element_type=f32)
        a2 = jnp.maximum(t + b2_ref[...], 0.0)
        acc_ref[...] += jnp.dot(a2, wf1_ref[h], preferred_element_type=f32)

    # fc1 bias + ReLU, then fc3 as multiply + lane reduction (the HID padding
    # lanes are exactly zero, so they contribute nothing).
    hid = jnp.maximum(acc_ref[...] + bf1_ref[...], 0.0)             # (TB, HIDP)
    o_ref[...] = (jnp.sum(hid * w3_ref[...], axis=-1, keepdims=True)
                  + b3_ref[...])                                    # (TB, 1)


# ----------------------------------------------------------------------------
# One-time weight preparation (outside the forward path).
# ----------------------------------------------------------------------------
def prepare_params(params, state_size):
    """Convert PyTorch-layout params to the fused kernel's layouts (run once)."""
    (w1c, b1c, w2c, b2c, wf1, bf1, wf3, bf3) = params
    S = state_size
    f32 = jnp.float32
    WP1 = (S + 2) * C1

    # conv1 banded matrices, one per vertical tap, stacked along K (tap fusion):
    #   m1[kh, i, (w+1)*C1 + c] = w1[c, 0, kh, i - w + 1]   (kw = i-w+1 in [0,2])
    i = jnp.arange(S)
    w = jnp.arange(S)
    kw1 = i[:, None] - w[None, :] + 1
    ok1 = (kw1 >= 0) & (kw1 <= 2)
    v1 = w1c[:, 0, :, :][:, :, jnp.clip(kw1, 0, 2)]          # (C1, 3, S, S)
    v1 = jnp.where(ok1[None, None], v1, 0.0)
    m1 = jnp.transpose(v1, (1, 2, 3, 0)).reshape(3, S, S * C1)
    m1 = jnp.pad(m1, ((0, 0), (0, 0), (C1, C1)))             # bake conv2's W pad
    m1cat = m1.reshape(3 * S, WP1)                           # fused-tap K = 3S

    # conv2 banded matrices m2: (3, WP1, S*C2)
    #   m2[kh, j*C1 + cin, w*C2 + co] = w2[co, cin, kh, j - w]  (kw = j-w in [0,2])
    j = jnp.arange(S + 2)
    kw2 = j[:, None] - w[None, :]
    ok2 = (kw2 >= 0) & (kw2 <= 2)
    v2 = w2c[:, :, :, jnp.clip(kw2, 0, 2)]                   # (C2, C1, 3, S+2, S)
    v2 = jnp.where(ok2[None, None, None], v2, 0.0)
    m2 = jnp.transpose(v2, (2, 3, 1, 4, 0)).reshape(3, WP1, S * C2)

    # Biases broadcast along the interleaved (w, c) lanes; conv1's bias is zero
    # on the baked-in W-padding lanes so ReLU keeps them at exactly 0.
    b1v = jnp.concatenate([jnp.zeros((C1,), f32), jnp.tile(b1c, S),
                           jnp.zeros((C1,), f32)]).reshape(1, WP1)
    b2v = jnp.tile(b2c, S).reshape(1, S * C2)

    # fc1 weight: torch (HID, C2*S*S) with NCHW-major columns -> (S, S*C2, HIDP)
    # matching the kernel's (h, (w, c)) activation order, zero-padded to 128
    # output lanes.  fc3 weight/bias padded to match.
    wf1r = wf1.reshape(HID, C2, S, S).transpose(2, 3, 1, 0).reshape(S, S * C2, HID)
    wf1r = jnp.pad(wf1r, ((0, 0), (0, 0), (0, HIDP - HID)))
    bf1p = jnp.pad(bf1, (0, HIDP - HID)).reshape(1, HIDP)
    w3p = jnp.pad(wf3.reshape(HID), (0, HIDP - HID)).reshape(1, HIDP)

    return (m1cat.astype(f32), b1v.astype(f32), m2.astype(f32), b2v.astype(f32),
            wf1r.astype(f32), bf1p.astype(f32), w3p.astype(f32),
            bf3.reshape(1, 1).astype(f32))


def val_cnn_forward(x, prepped, tb_target=256):
    """x: (B, S, S) float32, prepped = prepare_params(...) -> (B, 1) float32."""
    (m1cat, b1v, m2, b2v, wf1r, bf1p, w3p, b3r) = prepped
    B, S, _ = x.shape
    WP1 = (S + 2) * C1

    TB = min(tb_target, B)                 # samples per grid step (batch tile)
    G = pl.cdiv(B, TB)
    Bp = G * TB
    if Bp != B:                            # pad batch to a multiple of TB
        x = jnp.pad(x, ((0, Bp - B), (0, 0), (0, 0)))

    # Layout plumbing only (tiny array, done once per call in XLA): H 'same'
    # padding, the 3-tap lane concatenation feeding the fused conv1 matmul, and
    # h-major batch tiling so the kernel's matmul rows are (spatial row, sample).
    xh = jnp.pad(x, ((0, 0), (1, 1), (0, 0)))                       # (Bp, S+2, S)
    xcat = jnp.concatenate(
        [xh[:, 0:S, :], xh[:, 1:S + 1, :], xh[:, 2:S + 2, :]], axis=-1)  # (Bp, S, 3S)
    xcat = (xcat.reshape(G, TB, S, 3 * S)
                .transpose(0, 2, 1, 3)
                .reshape(G * S, TB, 3 * S))                         # h-major rows

    def full(arr):                          # whole-array block, constant index map
        n = arr.ndim
        return pl.BlockSpec(arr.shape, lambda g, _n=n: (0,) * _n)

    out = pl.pallas_call(
        _valcnn_kernel,
        out_shape=jax.ShapeDtypeStruct((Bp, 1), jnp.float32),
        grid=(G,),
        in_specs=[
            pl.BlockSpec((S, TB, 3 * S), lambda g: (g, 0, 0)),
            full(m1cat), full(b1v), full(m2), full(b2v),
            full(wf1r), full(bf1p), full(w3p), full(b3r),
        ],
        out_specs=pl.BlockSpec((TB, 1), lambda g: (g, 0)),
        scratch_shapes=[
            pltpu.VMEM((S + 2, TB, WP1), jnp.float32),  # H-padded conv1 activations
            pltpu.VMEM((TB, HIDP), jnp.float32),        # fc1 accumulator
        ],
        compiler_params=pltpu.CompilerParams(
            dimension_semantics=("parallel",),
            vmem_limit_bytes=48 * 1024 * 1024),
    )(xcat, m1cat, b1v, m2, b2v, wf1r, bf1p, w3p, b3r)

    return out[:B]


# ----------------------------------------------------------------------------
# Deterministic parameter init (PyTorch-default-style uniform, fan_in based)
# ----------------------------------------------------------------------------
def init_params(key, state_size):
    fc_size = C2 * state_size ** 2
    ks = jax.random.split(key, 8)

    def u(k, shape, fan_in):
        bound = 1.0 / jnp.sqrt(float(fan_in))
        return jax.random.uniform(k, shape, jnp.float32, -bound, bound)

    w1c = u(ks[0], (C1, 1, 3, 3), 9)            # conv1 weight (OIHW)
    b1c = u(ks[1], (C1,), 9)
    w2c = u(ks[2], (C2, C1, 3, 3), 9 * C1)      # conv2 weight (OIHW)
    b2c = u(ks[3], (C2,), 9 * C1)
    wf1 = u(ks[4], (HID, fc_size), fc_size)     # fc1 weight (out, in)
    bf1 = u(ks[5], (HID,), fc_size)
    wf3 = u(ks[6], (1, HID), HID)               # fc3 weight (out, in)
    bf3 = u(ks[7], (1,), HID)
    return (w1c, b1c, w2c, b2c, wf1, bf1, wf3, bf3)


# Pure-JAX reference reproducing the PyTorch forward exactly (for validation).
def reference_forward(x, params):
    (w1c, b1c, w2c, b2c, wf1, bf1, wf3, bf3) = params
    dn = ("NCHW", "OIHW", "NCHW")
    y = x[:, None, :, :]
    y = jax.lax.conv_general_dilated(y, w1c, (1, 1), "SAME", dimension_numbers=dn)
    y = jnp.maximum(y + b1c[None, :, None, None], 0.0)
    y = jax.lax.conv_general_dilated(y, w2c, (1, 1), "SAME", dimension_numbers=dn)
    y = jnp.maximum(y + b2c[None, :, None, None], 0.0)
    y = y.reshape(y.shape[0], -1)
    y = jnp.maximum(y @ wf1.T + bf1, 0.0)
    return y @ wf3.T + bf3


if __name__ == "__main__":
    state_size = 16
    batch = 8

    key = jax.random.PRNGKey(0)
    kx, kp = jax.random.split(key)
    x = jax.random.normal(kx, (batch, state_size, state_size), jnp.float32)
    params = init_params(kp, state_size)
    prepped = prepare_params(params, state_size)     # one-time, outside forward

    fwd = jax.jit(val_cnn_forward)
    out = jax.block_until_ready(fwd(x, prepped))
    ref = jax.block_until_ready(reference_forward(x, params))

    assert out.shape == (batch, 1), out.shape
    assert jnp.allclose(out, ref, rtol=1e-3, atol=1e-3), (out, ref)
    print("KERNEL_OK")
</pallas_src>

<mosaic_0001>
module attributes {stable_mosaic.version = 11 : i64} {
  func.func @_valcnn_kernel(%arg0: i32, %arg1: memref<16x8x48xf32, #tpu.memory_space<vmem>>, %arg2: memref<48x288xf32, #tpu.memory_space<vmem>>, %arg3: memref<1x288xf32, #tpu.memory_space<vmem>>, %arg4: memref<3x288x512xf32, #tpu.memory_space<vmem>>, %arg5: memref<1x512xf32, #tpu.memory_space<vmem>>, %arg6: memref<16x512x128xf32, #tpu.memory_space<vmem>>, %arg7: memref<1x128xf32, #tpu.memory_space<vmem>>, %arg8: memref<1x128xf32, #tpu.memory_space<vmem>>, %arg9: memref<1x1xf32, #tpu.memory_space<vmem>>, %arg10: memref<8x1xf32, #tpu.memory_space<vmem>>, %arg11: memref<18x8x288xf32, #tpu.memory_space<vmem>>, %arg12: memref<8x128xf32, #tpu.memory_space<vmem>>) attributes {dimension_semantics = [#tpu.dimension_semantics<parallel>], iteration_bounds = array<i64: 1>, scalar_prefetch = 0 : i64, scratch_operands = 2 : i64, tpu.core_type = #tpu.core_type<tc>, window_params = [{transform_indices = @transform_0, window_bounds = array<i64: 16, 8, 48>}, {pipeline_mode = #tpu.pipeline_mode<synchronous>, transform_indices = @transform_1, window_bounds = array<i64: 48, 288>}, {pipeline_mode = #tpu.pipeline_mode<synchronous>, transform_indices = @transform_2, window_bounds = array<i64: 1, 288>}, {pipeline_mode = #tpu.pipeline_mode<synchronous>, transform_indices = @transform_3, window_bounds = array<i64: 3, 288, 512>}, {pipeline_mode = #tpu.pipeline_mode<synchronous>, transform_indices = @transform_4, window_bounds = array<i64: 1, 512>}, {pipeline_mode = #tpu.pipeline_mode<synchronous>, transform_indices = @transform_5, window_bounds = array<i64: 16, 512, 128>}, {pipeline_mode = #tpu.pipeline_mode<synchronous>, transform_indices = @transform_6, window_bounds = array<i64: 1, 128>}, {pipeline_mode = #tpu.pipeline_mode<synchronous>, transform_indices = @transform_7, window_bounds = array<i64: 1, 128>}, {pipeline_mode = #tpu.pipeline_mode<synchronous>, transform_indices = @transform_8, window_bounds = array<i64: 1, 1>}, {transform_indices = @transform_9, window_bounds = array<i64: 8, 1>}]} {
    %cst = arith.constant 0.000000e+00 : f32
    %0 = vector.broadcast %cst : f32 to vector<8x288xf32>
    %c0 = arith.constant 0 : index
    %c0_0 = arith.constant 0 : index
    %c0_1 = arith.constant 0 : index
    %1 = vector.load %arg11[%c0, %c0_0, %c0_1] : memref<18x8x288xf32, #tpu.memory_space<vmem>>, vector<1x8x288xf32>
    %2 = vector.shape_cast %1 : vector<1x8x288xf32> to vector<8x288xf32>
    %3 = vector.shape_cast %0 : vector<8x288xf32> to vector<1x8x288xf32>
    tpu.vector_store %arg11[%c0, %c0_0, %c0_1], %3 {strides = array<i32>} : memref<18x8x288xf32, #tpu.memory_space<vmem>>, vector<1x8x288xf32>,
    %c17 = arith.constant 17 : index
    %c0_2 = arith.constant 0 : index
    %c0_3 = arith.constant 0 : index
    %4 = vector.load %arg11[%c17, %c0_2, %c0_3] : memref<18x8x288xf32, #tpu.memory_space<vmem>>, vector<1x8x288xf32>
    %5 = vector.shape_cast %4 : vector<1x8x288xf32> to vector<8x288xf32>
    %6 = vector.shape_cast %0 : vector<8x288xf32> to vector<1x8x288xf32>
    tpu.vector_store %arg11[%c17, %c0_2, %c0_3], %6 {strides = array<i32>} : memref<18x8x288xf32, #tpu.memory_space<vmem>>, vector<1x8x288xf32>,
    %cst_4 = arith.constant 0.000000e+00 : f32
    %7 = vector.broadcast %cst_4 : f32 to vector<8x128xf32>
    %c0_5 = arith.constant 0 : index
    %c0_6 = arith.constant 0 : index
    %8 = vector.load %arg12[%c0_5, %c0_6] : memref<8x128xf32, #tpu.memory_space<vmem>>, vector<8x128xf32>
    tpu.vector_store %arg12[%c0_5, %c0_6], %7 {strides = array<i32>} : memref<8x128xf32, #tpu.memory_space<vmem>>, vector<8x128xf32>,
    %c0_i32 = arith.constant 0 : i32
    %c16_i32 = arith.constant 16 : i32
    %9 = arith.addi %c0_i32, %c16_i32 : i32
    %c1_i32 = arith.constant 1 : i32
    scf.for %arg13 = %c0_i32 to %9 step %c1_i32  : i32 {
      %c1_i32_24 = arith.constant 1 : i32
      %26 = arith.muli %arg13, %c1_i32_24 : i32
      %c0_i32_25 = arith.constant 0 : i32
      %27 = arith.addi %c0_i32_25, %26 : i32
      %28 = arith.index_cast %27 : i32 to index
      %c0_26 = arith.constant 0 : index
      %c0_27 = arith.constant 0 : index
      %29 = vector.load %arg1[%28, %c0_26, %c0_27] : memref<16x8x48xf32, #tpu.memory_space<vmem>>, vector<1x8x48xf32>
      %30 = vector.shape_cast %29 : vector<1x8x48xf32> to vector<8x48xf32>
      %c0_28 = arith.constant 0 : index
      %c0_29 = arith.constant 0 : index
      %31 = vector.load %arg2[%c0_28, %c0_29] : memref<48x288xf32, #tpu.memory_space<vmem>>, vector<48x288xf32>
      %cst_30 = arith.constant dense<0.000000e+00> : vector<8x288xf32>
      %32 = tpu.matmul %30, %31, %cst_30 {dimension_numbers = #tpu.dot_dimension_numbers<[1], [0], [0], [1], [0, 0, 1, 1], [], []>} : vector<8x48xf32>, vector<48x288xf32>, vector<8x288xf32> -> vector<8x288xf32>
      %c0_31 = arith.constant 0 : index
      %c0_32 = arith.constant 0 : index
      %33 = vector.load %arg3[%c0_31, %c0_32] : memref<1x288xf32, #tpu.memory_space<vmem>>, vector<1x288xf32>
      %34 = vector.broadcast %33 : vector<1x288xf32> to vector<8x288xf32>
      %35 = arith.addf %32, %34 : vector<8x288xf32>
      %cst_33 = arith.constant 0.000000e+00 : f32
      %36 = vector.broadcast %cst_33 : f32 to vector<8x288xf32>
      %37 = arith.maximumf %35, %36 : vector<8x288xf32>
      %c1_i32_34 = arith.constant 1 : i32
      %38 = arith.addi %27, %c1_i32_34 : i32
      %39 = arith.index_cast %38 : i32 to index
      %c0_35 = arith.constant 0 : index
      %c0_36 = arith.constant 0 : index
      %40 = vector.load %arg11[%39, %c0_35, %c0_36] : memref<18x8x288xf32, #tpu.memory_space<vmem>>, vector<1x8x288xf32>
      %41 = vector.shape_cast %40 : vector<1x8x288xf32> to vector<8x288xf32>
      %42 = vector.shape_cast %37 : vector<8x288xf32> to vector<1x8x288xf32>
      tpu.vector_store %arg11[%39, %c0_35, %c0_36], %42 {strides = array<i32>} : memref<18x8x288xf32, #tpu.memory_space<vmem>>, vector<1x8x288xf32>,
    }
    %c16_i32_7 = arith.constant 16 : i32
    %c0_i32_8 = arith.constant 0 : i32
    %c16_i32_9 = arith.constant 16 : i32
    %10 = arith.addi %c0_i32_8, %c16_i32_9 : i32
    %c1_i32_10 = arith.constant 1 : i32
    scf.for %arg13 = %c0_i32_8 to %10 step %c1_i32_10  : i32 {
      %c1_i32_24 = arith.constant 1 : i32
      %26 = arith.muli %arg13, %c1_i32_24 : i32
      %c0_i32_25 = arith.constant 0 : i32
      %27 = arith.addi %c0_i32_25, %26 : i32
      %28 = arith.index_cast %27 : i32 to index
      %c0_26 = arith.constant 0 : index
      %c0_27 = arith.constant 0 : index
      %29 = vector.load %arg11[%28, %c0_26, %c0_27] : memref<18x8x288xf32, #tpu.memory_space<vmem>>, vector<1x8x288xf32>
      %30 = vector.shape_cast %29 : vector<1x8x288xf32> to vector<8x288xf32>
      %c0_28 = arith.constant 0 : index
      %c0_29 = arith.constant 0 : index
      %c0_30 = arith.constant 0 : index
      %31 = vector.load %arg4[%c0_28, %c0_29, %c0_30] : memref<3x288x512xf32, #tpu.memory_space<vmem>>, vector<1x288x512xf32>
      %32 = vector.shape_cast %31 : vector<1x288x512xf32> to vector<288x512xf32>
      %cst_31 = arith.constant dense<0.000000e+00> : vector<8x512xf32>
      %33 = tpu.matmul %30, %32, %cst_31 {dimension_numbers = #tpu.dot_dimension_numbers<[1], [0], [0], [1], [0, 0, 1, 1], [], []>} : vector<8x288xf32>, vector<288x512xf32>, vector<8x512xf32> -> vector<8x512xf32>
      %c1_i32_32 = arith.constant 1 : i32
      %34 = arith.addi %27, %c1_i32_32 : i32
      %35 = arith.index_cast %34 : i32 to index
      %c0_33 = arith.constant 0 : index
      %c0_34 = arith.constant 0 : index
      %36 = vector.load %arg11[%35, %c0_33, %c0_34] : memref<18x8x288xf32, #tpu.memory_space<vmem>>, vector<1x8x288xf32>
      %37 = vector.shape_cast %36 : vector<1x8x288xf32> to vector<8x288xf32>
      %c1 = arith.constant 1 : index
      %c0_35 = arith.constant 0 : index
      %c0_36 = arith.constant 0 : index
      %38 = vector.load %arg4[%c1, %c0_35, %c0_36] : memref<3x288x512xf32, #tpu.memory_space<vmem>>, vector<1x288x512xf32>
      %39 = vector.shape_cast %38 : vector<1x288x512xf32> to vector<288x512xf32>
      %cst_37 = arith.constant dense<0.000000e+00> : vector<8x512xf32>
      %40 = tpu.matmul %37, %39, %cst_37 {dimension_numbers = #tpu.dot_dimension_numbers<[1], [0], [0], [1], [0, 0, 1, 1], [], []>} : vector<8x288xf32>, vector<288x512xf32>, vector<8x512xf32> -> vector<8x512xf32>
      %41 = arith.addf %33, %40 : vector<8x512xf32>
      %c2_i32 = arith.constant 2 : i32
      %42 = arith.addi %27, %c2_i32 : i32
      %43 = arith.index_cast %42 : i32 to index
      %c0_38 = arith.constant 0 : index
      %c0_39 = arith.constant 0 : index
      %44 = vector.load %arg11[%43, %c0_38, %c0_39] : memref<18x8x288xf32, #tpu.memory_space<vmem>>, vector<1x8x288xf32>
      %45 = vector.shape_cast %44 : vector<1x8x288xf32> to vector<8x288xf32>
      %c2 = arith.constant 2 : index
      %c0_40 = arith.constant 0 : index
      %c0_41 = arith.constant 0 : index
      %46 = vector.load %arg4[%c2, %c0_40, %c0_41] : memref<3x288x512xf32, #tpu.memory_space<vmem>>, vector<1x288x512xf32>
      %47 = vector.shape_cast %46 : vector<1x288x512xf32> to vector<288x512xf32>
      %cst_42 = arith.constant dense<0.000000e+00> : vector<8x512xf32>
      %48 = tpu.matmul %45, %47, %cst_42 {dimension_numbers = #tpu.dot_dimension_numbers<[1], [0], [0], [1], [0, 0, 1, 1], [], []>} : vector<8x288xf32>, vector<288x512xf32>, vector<8x512xf32> -> vector<8x512xf32>
      %49 = arith.addf %41, %48 : vector<8x512xf32>
      %c0_43 = arith.constant 0 : index
      %c0_44 = arith.constant 0 : index
      %50 = vector.load %arg5[%c0_43, %c0_44] : memref<1x512xf32, #tpu.memory_space<vmem>>, vector<1x512xf32>
      %51 = vector.broadcast %50 : vector<1x512xf32> to vector<8x512xf32>
      %52 = arith.addf %49, %51 : vector<8x512xf32>
      %cst_45 = arith.constant 0.000000e+00 : f32
      %53 = vector.broadcast %cst_45 : f32 to vector<8x512xf32>
      %54 = arith.maximumf %52, %53 : vector<8x512xf32>
      %c0_46 = arith.constant 0 : index
      %c0_47 = arith.constant 0 : index
      %55 = vector.load %arg12[%c0_46, %c0_47] : memref<8x128xf32, #tpu.memory_space<vmem>>, vector<8x128xf32>
      %56 = arith.index_cast %27 : i32 to index
      %c0_48 = arith.constant 0 : index
      %c0_49 = arith.constant 0 : index
      %57 = vector.load %arg6[%56, %c0_48, %c0_49] : memref<16x512x128xf32, #tpu.memory_space<vmem>>, vector<1x512x128xf32>
      %58 = vector.shape_cast %57 : vector<1x512x128xf32> to vector<512x128xf32>
      %cst_50 = arith.constant dense<0.000000e+00> : vector<8x128xf32>
      %59 = tpu.matmul %54, %58, %cst_50 {dimension_numbers = #tpu.dot_dimension_numbers<[1], [0], [0], [1], [0, 0, 1, 1], [], []>} : vector<8x512xf32>, vector<512x128xf32>, vector<8x128xf32> -> vector<8x128xf32>
      %60 = arith.addf %55, %59 : vector<8x128xf32>
      %c0_51 = arith.constant 0 : index
      %c0_52 = arith.constant 0 : index
      %61 = vector.load %arg12[%c0_51, %c0_52] : memref<8x128xf32, #tpu.memory_space<vmem>>, vector<8x128xf32>
      tpu.vector_store %arg12[%c0_51, %c0_52], %60 {strides = array<i32>} : memref<8x128xf32, #tpu.memory_space<vmem>>, vector<8x128xf32>,
    }
    %c16_i32_11 = arith.constant 16 : i32
    %c0_12 = arith.constant 0 : index
    %c0_13 = arith.constant 0 : index
    %11 = vector.load %arg12[%c0_12, %c0_13] : memref<8x128xf32, #tpu.memory_space<vmem>>, vector<8x128xf32>
    %c0_14 = arith.constant 0 : index
    %c0_15 = arith.constant 0 : index
    %12 = vector.load %arg7[%c0_14, %c0_15] : memref<1x128xf32, #tpu.memory_space<vmem>>, vector<1x128xf32>
    %13 = vector.broadcast %12 : vector<1x128xf32> to vector<8x128xf32>
    %14 = arith.addf %11, %13 : vector<8x128xf32>
    %cst_16 = arith.constant 0.000000e+00 : f32
    %15 = vector.broadcast %cst_16 : f32 to vector<8x128xf32>
    %16 = arith.maximumf %14, %15 : vector<8x128xf32>
    %c0_17 = arith.constant 0 : index
    %c0_18 = arith.constant 0 : index
    %17 = vector.load %arg8[%c0_17, %c0_18] : memref<1x128xf32, #tpu.memory_space<vmem>>, vector<1x128xf32>
    %18 = vector.broadcast %17 : vector<1x128xf32> to vector<8x128xf32>
    %19 = arith.mulf %16, %18 : vector<8x128xf32>
    %cst_19 = arith.constant dense<0.000000e+00> : vector<8xf32>
    %20 = vector.multi_reduction <add>, %19, %cst_19 [1] : vector<8x128xf32> to vector<8xf32>
    %21 = vector.shape_cast %20 : vector<8xf32> to vector<8x1xf32>
    %c0_20 = arith.constant 0 : index
    %c0_21 = arith.constant 0 : index
    %22 = vector.load %arg9[%c0_20, %c0_21] : memref<1x1xf32, #tpu.memory_space<vmem>>, vector<1x1xf32>
    %23 = vector.broadcast %22 : vector<1x1xf32> to vector<8x1xf32>
    %24 = arith.addf %21, %23 : vector<8x1xf32>
    %c0_22 = arith.constant 0 : index
    %c0_23 = arith.constant 0 : index
    %25 = vector.load %arg10[%c0_22, %c0_23] : memref<8x1xf32, #tpu.memory_space<vmem>>, vector<8x1xf32>
    tpu.vector_store %arg10[%c0_22, %c0_23], %24 {strides = array<i32>} : memref<8x1xf32, #tpu.memory_space<vmem>>, vector<8x1xf32>,
    return
  }
  func.func @transform_0(%arg0: i32) -> (i32, i32, i32) {
    %c0_i32 = arith.constant 0 : i32
    %c0_i32_0 = arith.constant 0 : i32
    %c0_i32_1 = arith.constant 0 : i32
    return %arg0, %c0_i32, %c0_i32_0 : i32, i32, i32
  }
  func.func @transform_1(%arg0: i32) -> (i32, i32) {
    %c0_i32 = arith.constant 0 : i32
    %c0_i32_0 = arith.constant 0 : i32
    %c0_i32_1 = arith.constant 0 : i32
    return %c0_i32, %c0_i32_0 : i32, i32
  }
  func.func @transform_2(%arg0: i32) -> (i32, i32) {
    %c0_i32 = arith.constant 0 : i32
    %c0_i32_0 = arith.constant 0 : i32
    %c0_i32_1 = arith.constant 0 : i32
    return %c0_i32, %c0_i32_0 : i32, i32
  }
  func.func @transform_3(%arg0: i32) -> (i32, i32, i32) {
    %c0_i32 = arith.constant 0 : i32
    %c0_i32_0 = arith.constant 0 : i32
    %c0_i32_1 = arith.constant 0 : i32
    %c0_i32_2 = arith.constant 0 : i32
    return %c0_i32, %c0_i32_0, %c0_i32_1 : i32, i32, i32
  }
  func.func @transform_4(%arg0: i32) -> (i32, i32) {
    %c0_i32 = arith.constant 0 : i32
    %c0_i32_0 = arith.constant 0 : i32
    %c0_i32_1 = arith.constant 0 : i32
    return %c0_i32, %c0_i32_0 : i32, i32
  }
  func.func @transform_5(%arg0: i32) -> (i32, i32, i32) {
    %c0_i32 = arith.constant 0 : i32
    %c0_i32_0 = arith.constant 0 : i32
    %c0_i32_1 = arith.constant 0 : i32
    %c0_i32_2 = arith.constant 0 : i32
    return %c0_i32, %c0_i32_0, %c0_i32_1 : i32, i32, i32
  }
  func.func @transform_6(%arg0: i32) -> (i32, i32) {
    %c0_i32 = arith.constant 0 : i32
    %c0_i32_0 = arith.constant 0 : i32
    %c0_i32_1 = arith.constant 0 : i32
    return %c0_i32, %c0_i32_0 : i32, i32
  }
  func.func @transform_7(%arg0: i32) -> (i32, i32) {
    %c0_i32 = arith.constant 0 : i32
    %c0_i32_0 = arith.constant 0 : i32
    %c0_i32_1 = arith.constant 0 : i32
    return %c0_i32, %c0_i32_0 : i32, i32
  }
  func.func @transform_8(%arg0: i32) -> (i32, i32) {
    %c0_i32 = arith.constant 0 : i32
    %c0_i32_0 = arith.constant 0 : i32
    %c0_i32_1 = arith.constant 0 : i32
    return %c0_i32, %c0_i32_0 : i32, i32
  }
  func.func @transform_9(%arg0: i32) -> (i32, i32) {
    %c0_i32 = arith.constant 0 : i32
    %c0_i32_0 = arith.constant 0 : i32
    return %arg0, %c0_i32 : i32, i32
  }
}

</mosaic_0001>

<bundles_post_ra>
// kernel: val_cnn_forward.1
= control target key start
LH: loop header
LB: loop body
LE: loop exit
PB: predicated region body
PF: predicated region fallthrough
CT: control target
= control target key end

     0   :  { %s3121_s0 = inlined_call_operand.vmem [shape: f32[16,8,48], index: 0, kind: input, shape index: {}]   ;;  %s3122_s1 = inlined_call_operand.hbm [shape: f32[48,288], index: 1, kind: input, shape index: {}]   ;;  %s3123_s2 = inlined_call_operand.hbm [shape: f32[1,288], index: 2, kind: input, shape index: {}]   ;;  %s3124_s3 = inlined_call_operand.hbm [shape: f32[3,288,512], index: 3, kind: input, shape index: {}]   ;;  %s3125_s4 = inlined_call_operand.hbm [shape: f32[1,512], index: 4, kind: input, shape index: {}]   ;;  %s3126_s5 = inlined_call_operand.hbm [shape: f32[16,512,128], index: 5, kind: input, shape index: {}]   ;;  %s3127_s6 = inlined_call_operand.hbm [shape: f32[1,128], index: 6, kind: input, shape index: {}]   ;;  %s3128_s7 = inlined_call_operand.hbm [shape: f32[1,128], index: 7, kind: input, shape index: {}]   ;;  %s3129_s8 = inlined_call_operand.<no memory space> [shape: f32[1,1], index: 8, kind: input, shape index: {}]   ;;  %s3130_s9 = inlined_call_operand.vmem [shape: f32[8,1], index: 9, kind: output, shape index: {}]  }
   0x1   :  { %v14_v0 = vstv %s3129_s8 }
   0x2   :  { %15 = vst [vmem:[#allocation4] sm:$0x1] %v14_v0 }
   0x3   :  { %16 = vsyncpa [#allocation6], 0 }
   0x4   :  { %17 = vsyncpa [#allocation8], 0 }
   0x5   :  { %18 = vsyncpa [#allocation11], 0 }
   0x6   :  { %19 = vsyncpa [#allocation14], 0  ;;  %s2821_s11 = smov [#allocation7]   ;;  %s2822_s13 = smov [#allocation10]  }
   0x7   :  { %s40_s12 = sshll.u32 %s2821_s11, 4  ;;  %s62_s14 = sshll.u32 %s2822_s13, 4  ;;  %s41_s12 = int_to_ptr.vmem [resolvable:$true] %s40_s12  ;;  %s63_s14 = int_to_ptr.vmem [resolvable:$true] %s62_s14 }
   0x8   :  { %s2643_s17 = scalar_lea.hbm %s3123_s2, 48 }
   0x9   :  { %p2644_p0 = scmp.ne.s32.totalorder %s3123_s2, %s2643_s17  ;;  %p2647_p1 = scmp.lt.u32.totalorder %s2643_s17, %s3123_s2 }
   0xb   :  { %p2649_p2 = pnand %p2647_p1, %p2644_p0 }
   0xd   :  { %2652 = shalt.err (!%p2649_p2)
}
   0xe   :  { %s2653_s21 = scalar_lea.vmem %s41_s12, 48  ;;  %s2657_s22 = scalar_lea.vmem %s41_s12, 64 }
   0xf   :  { %p2654_p3 = scmp.ne.s32.totalorder %s41_s12, %s2653_s21  ;;  %p2658_p4 = scmp.lt.s32.totalorder %s41_s12, %s41_s12 }
  0x10   :  { %p2659_p5 = scmp.lt.s32.totalorder %s2657_s22, %s2653_s21 }
  0x12   :  { %p2660_p6 = por %p2659_p5, %p2658_p4 }
  0x14   :  { %p2661_p7 = pnand %p2660_p6, %p2654_p3 }
  0x16   :  { %2664 = shalt.err (!%p2661_p7)
}
  0x17   :  { %43 = dma.hbm_to_vmem [thread:$0]  %s3123_s2, 48, %s41_s12, [#allocation8]  }
  0x18   :  { %s2665_s27 = scalar_lea.hbm %s3125_s4, 64 }
  0x19   :  { %p2666_p8 = scmp.ne.s32.totalorder %s3125_s4, %s2665_s27  ;;  %p2669_p9 = scmp.lt.u32.totalorder %s2665_s27, %s3125_s4 }
  0x1b   :  { %p2671_p10 = pnand %p2669_p9, %p2666_p8 }
  0x1d   :  { %2674 = shalt.err (!%p2671_p10)
}
  0x1e   :  { %s2675_s11 = scalar_lea.vmem %s63_s14, 64  ;;  %p2680_p12 = scmp.lt.s32.totalorder %s63_s14, %s63_s14 }
  0x1f   :  { %p2676_p11 = scmp.ne.s32.totalorder %s63_s14, %s2675_s11  ;;  %p2681_p13 = scmp.lt.s32.totalorder %s2675_s11, %s2675_s11 }
  0x21   :  { %p2682_p0 = por %p2681_p13, %p2680_p12 }
  0x23   :  { %p2683_p1 = pnand %p2682_p0, %p2676_p11 }
  0x25   :  { %2686 = shalt.err (!%p2683_p1)
}
  0x26   :  { %65 = dma.hbm_to_vmem [thread:$0]  %s3125_s4, 64, %s63_s14, [#allocation11]  }
  0x27   :  { %s2823_s13 = smov [#allocation13]   ;;  %s2824_s16 = smov [#allocation5]  }
  0x28   :  { %s84_s15 = sshll.u32 %s2823_s13, 4  ;;  %s27_s17 = sshll.u32 %s2824_s16, 4  ;;  %s85_s15 = int_to_ptr.vmem [resolvable:$true] %s84_s15  ;;  %s2916_s17 = int_to_ptr.vmem [resolvable:$true] %s27_s17 }
  0x29   :  { %s2687_s8 = scalar_lea.hbm %s3127_s6, 16 }
  0x2a   :  { %p2688_p2 = scmp.ne.s32.totalorder %s3127_s6, %s2687_s8  ;;  %p2691_p3 = scmp.lt.u32.totalorder %s2687_s8, %s3127_s6 }
  0x2c   :  { %p2693_p4 = pnand %p2691_p3, %p2688_p2 }
  0x2e   :  { %2696 = shalt.err (!%p2693_p4)
}
  0x2f   :  { %s2697_s4 = scalar_lea.vmem %s85_s15, 16  ;;  %s2701_s14 = scalar_lea.vmem %s85_s15, 32 }
  0x30   :  { %p2698_p5 = scmp.ne.s32.totalorder %s85_s15, %s2697_s4  ;;  %p2702_p6 = scmp.lt.s32.totalorder %s85_s15, %s85_s15 }
  0x31   :  { %p2703_p7 = scmp.lt.s32.totalorder %s2701_s14, %s2697_s4 }
  0x33   :  { %p2704_p8 = por %p2703_p7, %p2702_p6 }
  0x35   :  { %p2705_p9 = pnand %p2704_p8, %p2698_p5 }
  0x37   :  { %2708 = shalt.err (!%p2705_p9)
}
  0x38   :  { %87 = dma.hbm_to_vmem [thread:$0]  %s3127_s6, 16, %s85_s15, [#allocation14]  }
  0x39   :  { %s2709_s28 = scalar_lea.hbm %s3122_s1, 2304 }
  0x3a   :  { %p2710_p10 = scmp.ne.s32.totalorder %s3122_s1, %s2709_s28  ;;  %p2713_p11 = scmp.lt.u32.totalorder %s2709_s28, %s3122_s1 }
  0x3c   :  { %p2715_p12 = pnand %p2713_p11, %p2710_p10 }
  0x3e   :  { %2718 = shalt.err (!%p2715_p12)
}
  0x3f   :  { %s2719_s2 = scalar_lea.vmem %s2916_s17, 2304  ;;  %p2724_p0 = scmp.lt.s32.totalorder %s2916_s17, %s2916_s17 }
  0x40   :  { %p2720_p13 = scmp.ne.s32.totalorder %s2916_s17, %s2719_s2  ;;  %p2725_p1 = scmp.lt.s32.totalorder %s2719_s2, %s2719_s2 }
  0x42   :  { %p2726_p2 = por %p2725_p1, %p2724_p0 }
  0x44   :  { %p2727_p3 = pnand %p2726_p2, %p2720_p13 }
  0x46   :  { %2730 = shalt.err (!%p2727_p3)
}
  0x47   :  { %s2825_s6 = smov 384   ;;  %s2826_s12 = smov 24  }
  0x48   :  { %33 = dma.hbm_to_vmem [thread:$0]  %s3122_s1, 2304, %s2916_s17, [#allocation6], %s2825_s6, %s2825_s6, %s2826_s12  }
  0x49   :  { %s2827_s16 = smov [#allocation9]   ;;  %s2731_s20 = scalar_lea.hbm %s3124_s3, 55296 }
  0x4a   :  { %s49_s18 = sshll.u32 %s2827_s16, 4  ;;  %p2732_p4 = scmp.ne.s32.totalorder %s3124_s3, %s2731_s20  ;;  %s50_s18 = int_to_ptr.vmem [resolvable:$true] %s49_s18 }
  0x4b   :  { %p2735_p5 = scmp.lt.u32.totalorder %s2731_s20, %s3124_s3 }
  0x4d   :  { %p2737_p6 = pnand %p2735_p5, %p2732_p4 }
  0x4f   :  { %2740 = shalt.err (!%p2737_p6)
}
  0x50   :  { %s2741_s14 = scalar_lea.vmem %s50_s18, 55296  ;;  %p2746_p8 = scmp.lt.s32.totalorder %s50_s18, %s50_s18 }
  0x51   :  { %p2742_p7 = scmp.ne.s32.totalorder %s50_s18, %s2741_s14  ;;  %p2747_p9 = scmp.lt.s32.totalorder %s2741_s14, %s2741_s14 }
  0x53   :  { %p2748_p10 = por %p2747_p9, %p2746_p8 }
  0x55   :  { %p2749_p11 = pnand %p2748_p10, %p2742_p7 }
  0x57   :  { %2752 = shalt.err (!%p2749_p11)
}
  0x58   :  { %s2828_s1 = smov 512   ;;  %s2829_s17 = smov 32  }
  0x59   :  { %55 = dma.hbm_to_vmem [thread:$0]  %s3124_s3, 55296, %s50_s18, [#allocation8], %s2828_s1, %s2828_s1, %s2829_s17  }
  0x5a   :  { %s2830_s26 = smov [#allocation12]   ;;  %s2753_s30 = scalar_lea.hbm %s3126_s5, 131072 }
  0x5b   :  { %s71_s27 = sshll.u32 %s2830_s26, 4  ;;  %p2754_p12 = scmp.ne.s32.totalorder %s3126_s5, %s2753_s30  ;;  %s72_s27 = int_to_ptr.vmem [resolvable:$true] %s71_s27 }
  0x5c   :  { %p2757_p13 = scmp.lt.u32.totalorder %s2753_s30, %s3126_s5 }
  0x5e   :  { %p2759_p0 = pnand %p2757_p13, %p2754_p12 }
  0x60   :  { %2762 = shalt.err (!%p2759_p0)
}
  0x61   :  { %s2763_s12 = scalar_lea.vmem %s72_s27, 131072  ;;  %p2768_p2 = scmp.lt.s32.totalorder %s72_s27, %s72_s27 }
  0x62   :  { %p2764_p1 = scmp.ne.s32.totalorder %s72_s27, %s2763_s12  ;;  %p2769_p3 = scmp.lt.s32.totalorder %s2763_s12, %s2763_s12 }
  0x64   :  { %p2770_p4 = por %p2769_p3, %p2768_p2 }
  0x66   :  { %p2771_p5 = pnand %p2770_p4, %p2764_p1 }
  0x68   :  { %2774 = shalt.err (!%p2771_p5)
}
  0x69   :  { %s2831_s3 = smov 128   ;;  %s2832_s13 = smov 8  }
  0x6a   :  { %77 = dma.hbm_to_vmem [thread:$0]  %s3126_s5, 131072, %s72_s27, [#allocation11], %s2831_s3, %s2831_s3, %s2832_s13  }
  0x6b   :  { %s2833_s18 = smov [#allocation15]   ;;  %s2775_s21 = scalar_lea.hbm %s3128_s7, 16 }
  0x6c   :  { %s94_s19 = sshll.u32 %s2833_s18, 4  ;;  %p2776_p6 = scmp.ne.s32.totalorder %s3128_s7, %s2775_s21  ;;  %s95_s19 = int_to_ptr.vmem [resolvable:$true] %s94_s19 }
  0x6d   :  { %p2779_p7 = scmp.lt.u32.totalorder %s2775_s21, %s3128_s7 }
  0x6f   :  { %p2781_p8 = pnand %p2779_p7, %p2776_p6 }
  0x71   :  { %2784 = shalt.err (!%p2781_p8)
}
  0x72   :  { %s2785_s1 = scalar_lea.vmem %s95_s19, 16  ;;  %s2789_s5 = scalar_lea.vmem %s95_s19, 32 }
  0x73   :  { %p2786_p9 = scmp.ne.s32.totalorder %s95_s19, %s2785_s1  ;;  %p2790_p10 = scmp.lt.s32.totalorder %s95_s19, %s95_s19 }
  0x74   :  { %p2791_p11 = scmp.lt.s32.totalorder %s2789_s5, %s2785_s1 }
  0x76   :  { %p2792_p12 = por %p2791_p11, %p2790_p10 }
  0x78   :  { %p2793_p13 = pnand %p2792_p12, %p2786_p9 }
  0x7a   :  { %2796 = shalt.err (!%p2793_p13)
}
  0x7b   :  { %97 = dma.hbm_to_vmem [thread:$0]  %s3128_s7, 16, %s95_s19, [#allocation14]  }
  0x7c   :  { %2805 = dma.done.wait [#allocation6], 2304  }
  0x7d   :  { %2806 = vsyncadd [#allocation6], 4294964992 }
  0x7e   :  { %2807 = dma.done.wait [#allocation8], 55344  }
  0x7f   :  { %2808 = vsyncadd [#allocation8], 4294911952 }
  0x80   :  { %2809 = dma.done.wait [#allocation11], 131136  }
  0x81   :  { %2810 = vsyncadd [#allocation11], 4294836160 }
  0x82   :  { %2811 = dma.done.wait [#allocation14], 32  }
  0x83   :  { %2812 = vsyncadd [#allocation14], 4294967264  ;;  %vm123_vm0 = vcmask 261120   ;;  %v2834_v1 = vmov 0.0   ;;  %s2985_s7 = smov 0  }
  0x84   :  { %121 = vst [vmem:[#allocation2] sm:$0xff] %v2834_v1  ;;  %122 = vst [vmem:[#allocation2 + $0x8] sm:$0xff] %v2834_v1 }
  0x85   :  { %126 = vst [vmem:[#allocation2 + $0x198] sm:$0xff] %v2834_v1  ;;  %127 = vst [vmem:[#allocation2 + $0x1a0] sm:$0xff] %v2834_v1 }
  0x86   :  { %129 = vst [vmem:[#allocation3] sm:$0xff] %v2834_v1  ;;  %124 = vst.msk [vmem:[#allocation2 + $0x10] sm:$0xff] %vm123_vm0, %v2834_v1 }
  0x87   :  { %128 = vst.msk [vmem:[#allocation2 + $0x1a8] sm:$0xff] %vm123_vm0, %v2834_v1 }
  0x88 LB: > { %v140_v2 = vld [vmem:[#allocation5 + $0x8] sm:$0xff]  ;;  %v143_v3 = vld [vmem:[#allocation5 + $0x20] sm:$0xff]  ;;  %v2835_v6 = vmov 0.0|0.0   ;;  %v142_v7 = vld [vmem:[#allocation5 + $0x18] sm:$0xff]  ;;  %v2836_v10 = vmov 0.0   ;;  %vm2837_vm1 = vmmov 0   ;;  %v159_v32 = vlaneseq  ;;  %s2815_s7 = sphi %s2985_s7, %s135_s7  }
  0x89   : > { %v139_v4 = vld [vmem:[#allocation5] sm:$0xff]  ;;  %v2072_v5 = vpack.c.bf16 %v143_v3, %v140_v2  ;;  %2084 = vmatprep.subr.bf16.mxu1 %v2835_v6  ;;  %v141_v8 = vld [vmem:[#allocation5 + $0x10] sm:$0xff]  ;;  %v144_v9 = vld [vmem:[#allocation5 + $0x28] sm:$0xff]  ;;  %242 = vmatprep.mubr.f32.mxu0 %v2836_v10  ;;  %s1956_s25 = sshll.u32 %s2815_s7, 3  ;;  %vm174_vm2 = vcmask 392192   ;;  %s1933_s29 = smul.u32 24, %s2815_s7 }
  0x8a   : > { %v2074_v11 = vpack.c.bf16 %v142_v7, %v139_v4  ;;  %v2085_v12 = vpack.c.bf16 %v144_v9, %v141_v8  ;;  %v146_v13 = vld [vmem:[#allocation5 + $0x38] sm:$0xff]  ;;  %v149_v14 = vld [vmem:[#allocation5 + $0x50] sm:$0xff]  ;;  %2069 = vmatprep.mubr.msk.f32.mxu1 %vm2837_vm1, %v2836_v10  ;;  %v148_v17 = vld [vmem:[#allocation5 + $0x48] sm:$0xff]  ;;  %s137_s28 = scalar_lea.vmem %s3121_s0, %s1956_s25  ;;  %v2994_v33 = vshrl.u32 %v159_v32, 7  ;;  %s135_s7 = sadd.s32 1, %s2815_s7  }
  0x8b   : > { %v145_v15 = vld [vmem:[#allocation5 + $0x30] sm:$0xff]  ;;  %2073 = vmatprep.subr.bf16.mxu0 %v2072_v5  ;;  %v2076_v16 = vpack.c.bf16 %v149_v14, %v146_v13  ;;  %v147_v18 = vld [vmem:[#allocation5 + $0x40] sm:$0xff]  ;;  %v150_v19 = vld [vmem:[#allocation5 + $0x58] sm:$0xff]  ;;  %s1934_s30 = scalar_lea.vmem [#allocation2], %s1933_s29  ;;  %p132_p0 = scmp.ge.s32.totalorder %s135_s7, 16  }
  0x8c   : > { %2075 = vmatpush1.bf16.msra.mxu0 %v2074_v11  ;;  %2086 = vmatpush3.bf16.msra.mxu1 %v2085_v12  ;;  %v2078_v20 = vpack.c.bf16 %v148_v17, %v145_v15  ;;  %v2088_v21 = vpack.c.bf16 %v150_v19, %v147_v18  ;;  %v152_v22 = vld [vmem:[#allocation5 + $0x68] sm:$0xff]  ;;  %v155_v23 = vld [vmem:[#allocation5 + $0x80] sm:$0xff]  ;;  %v154_v26 = vld [vmem:[#allocation5 + $0x78] sm:$0xff]  ;;  %v161_v34 = vsub.s32 0, %v2994_v33  ;;  %v169_v35 = vsub.s32 2, %v2994_v33  ;;  %s3010_s10 = smov (%p132_p0), 0  }
  0x8d   : > { %v151_v24 = vld [vmem:[#allocation5 + $0x60] sm:$0xff]  ;;  %2077 = vmatprep.subr.bf16.mxu0 %v2076_v16  ;;  %2087 = vmatprep.subr.bf16.mxu1 %v2835_v6  ;;  %v2080_v25 = vpack.c.bf16 %v155_v23, %v152_v22  ;;  %v153_v27 = vld [vmem:[#allocation5 + $0x70] sm:$0xff]  ;;  %v156_v28 = vld [vmem:[#allocation5 + $0x88] sm:$0xff]  ;;  %v165_v37 = vsub.s32 1, %v2994_v33 }
  0x8e   : > { %v2082_v29 = vpack.c.bf16 %v154_v26, %v151_v24  ;;  %v2091_v30 = vpack.c.bf16 %v156_v28, %v153_v27  ;;  %v138_v31 = vld [vmem:[%s137_s28] sm:$0xff]  ;;  %v157_v36 = vld [vmem:[#allocation7] sm:$0x7] }
  0x8f   : > { %v162_v38 = vrot.slane %v157_v36, %v161_v34  ;;  %v170_v39 = vrot.slane %v157_v36, %v169_v35  ;;  %v166_v40 = vrot.slane %v157_v36, %v165_v37 }
  0x90   : > { %2079 = vmatpush1.bf16.msra.mxu0 %v2078_v20  ;;  %2089 = vmatpush3.bf16.msra.mxu1 %v2088_v21 }
  0x91   : > { %2081 = vmatprep.subr.bf16.mxu0 %v2080_v25  ;;  %2090 = vmatprep.subr.bf16.mxu1 %v2835_v6 }
  0x94   : > { %2083 = vmatpush1.bf16.msra.mxu0 %v2082_v29  ;;  %2092 = vmatpush3.bf16.msra.mxu1 %v2091_v30 }
  0x97   : > { %1957 = vmatmul.mubr.msk.f32.vlgmr.msra.gmra.mrb[0].mxu0 %vm174_vm2, %v138_v31  ;;  %2070 = vmatmul.mubr.msk.f32.vlgmr.msra.gmra.mrb[0].mxu1 %vm174_vm2, %v138_v31 }
 0x16a   : > { %v244_v41 = vpop.f32.mrb[0].mxu0  ;;  %v315_v42 = vpop.f32.mrb[0].mxu1  ;;  %134 = sbr.rel (!%p132_p0) target bundleno = 136 (0x88), region = 107 }
 0x16b   : > { %v245_v43 = vadd.f32 %v244_v41, %v162_v38  ;;  %v316_v44 = vadd.f32 %v315_v42, %v170_v39  ;;  %v246_v45 = vpop.f32.mrb[1].mxu0  ;;  %v2071_v46 = vpop.f32.mrb[1].mxu1 }
 0x16c   : > { %v247_v47 = vadd.f32 %v246_v45, %v166_v40 }
 0x16d   : > { %v319_v48 = vmax.f32 %v245_v43, 0.0  ;;  %v321_v49 = vmax.f32 %v316_v44, 0.0 }
 0x16e   : > { %v320_v50 = vmax.f32 %v247_v47, 0.0 }
 0x16f   : > { %1959 = vst [vmem:[%s1934_s30 + $0x18] sm:$0xff] %v319_v48  ;;  %1961 = vst.msk [vmem:[%s1934_s30 + $0x28] sm:$0xff] %vm123_vm0, %v321_v49 }
 0x170   : > { %1960 = vst [vmem:[%s1934_s30 + $0x20] sm:$0xff] %v320_v50 }
 0x171 LB: > { %v494_v51 = vld [vmem:[#allocation9 + $0x488] sm:$0xff]  ;;  %v496_v53 = vld [vmem:[#allocation9 + $0x498] sm:$0xff]  ;;  %v493_v56 = vld [vmem:[#allocation9 + $0x480] sm:$0xff]  ;;  %s1979_s0 = smul.u32 24, %s2819_s10  ;;  %s1975_s2 = sshll.u32 %s2819_s10, 9  ;;  %s2819_s10 = sphi %s3010_s10, %s334_s10  }
 0x172   : > { %v498_v52 = vld [vmem:[#allocation9 + $0x4a8] sm:$0xff]  ;;  %v500_v55 = vld [vmem:[#allocation9 + $0x4b8] sm:$0xff]  ;;  %v497_v57 = vld [vmem:[#allocation9 + $0x4a0] sm:$0xff]  ;;  %s3037_s6 = scalar_lea.vmem [#allocation12], %s1975_s2  ;;  %s334_s10 = sadd.s32 1, %s2819_s10  }
 0x173   : > { %v2093_v54 = vpack.c.bf16 %v498_v52, %v494_v51  ;;  %v2165_v58 = vpack.c.bf16 %v500_v55, %v496_v53  ;;  %v2095_v59 = vpack.c.bf16 %v497_v57, %v493_v56  ;;  %v495_v60 = vld [vmem:[#allocation9 + $0x490] sm:$0xff]  ;;  %v502_v62 = vld [vmem:[#allocation9 + $0x4c8] sm:$0xff]  ;;  %v504_v1 = vld [vmem:[#allocation9 + $0x4d8] sm:$0xff]  ;;  %s3018_s11 = scalar_lea.vmem [#allocation2], %s1979_s0  ;;  %p331_p1 = scmp.ge.s32.totalorder %s334_s10, 16  }
 0x174   : > { %v499_v61 = vld [vmem:[#allocation9 + $0x4b0] sm:$0xff]  ;;  %v506_v0 = vld [vmem:[#allocation9 + $0x4e8] sm:$0xff]  ;;  %v508_v2 = vld [vmem:[#allocation9 + $0x4f8] sm:$0xff]  ;;  %vm1921_vm3 = vcmask (%p331_p1), 7168  }
 0x175   : > { %2094 = vmatprep.subr.bf16.mxu0 %v2093_v54  ;;  %v2167_v63 = vpack.c.bf16 %v499_v61, %v495_v60  ;;  %2166 = vmatprep.subr.bf16.mxu1 %v2165_v58  ;;  %v2097_v3 = vpack.c.bf16 %v506_v0, %v502_v62  ;;  %v2169_v4 = vpack.c.bf16 %v508_v2, %v504_v1  ;;  %v501_v5 = vld [vmem:[#allocation9 + $0x4c0] sm:$0xff]  ;;  %v503_v7 = vld [vmem:[#allocation9 + $0x4d0] sm:$0xff]  ;;  %v510_v10 = vld [vmem:[#allocation9 + $0x508] sm:$0xff] }
 0x176   : > { %2096 = vmatpush1.bf16.msra.mxu0 %v2095_v59  ;;  %v505_v6 = vld [vmem:[#allocation9 + $0x4e0] sm:$0xff]  ;;  %v507_v9 = vld [vmem:[#allocation9 + $0x4f0] sm:$0xff]  ;;  %v514_v11 = vld [vmem:[#allocation9 + $0x528] sm:$0xff] }
 0x177   : > { %2168 = vmatpush1.bf16.msra.mxu1 %v2167_v63  ;;  %v2099_v8 = vpack.c.bf16 %v505_v6, %v501_v5  ;;  %2098 = vmatprep.subr.bf16.mxu0 %v2097_v3  ;;  %v2171_v12 = vpack.c.bf16 %v507_v9, %v503_v7  ;;  %v2101_v13 = vpack.c.bf16 %v514_v11, %v510_v10  ;;  %v512_v14 = vld [vmem:[#allocation9 + $0x518] sm:$0xff]  ;;  %v509_v16 = vld [vmem:[#allocation9 + $0x500] sm:$0xff]  ;;  %v511_v19 = vld [vmem:[#allocation9 + $0x510] sm:$0xff] }
 0x178   : > { %2170 = vmatprep.subr.bf16.mxu1 %v2169_v4  ;;  %v516_v15 = vld [vmem:[#allocation9 + $0x538] sm:$0xff]  ;;  %v513_v18 = vld [vmem:[#allocation9 + $0x520] sm:$0xff]  ;;  %v515_v20 = vld [vmem:[#allocation9 + $0x530] sm:$0xff] }
 0x179   : > { %v2173_v17 = vpack.c.bf16 %v516_v15, %v512_v14  ;;  %v2103_v21 = vpack.c.bf16 %v513_v18, %v509_v16  ;;  %v518_v22 = vld [vmem:[#allocation9 + $0x548] sm:$0xff]  ;;  %v520_v24 = vld [vmem:[#allocation9 + $0x558] sm:$0xff]  ;;  %v2175_v25 = vpack.c.bf16 %v515_v20, %v511_v19  ;;  %v517_v28 = vld [vmem:[#allocation9 + $0x540] sm:$0xff] }
 0x17a   : > { %2100 = vmatpush1.bf16.msra.mxu0 %v2099_v8  ;;  %v522_v23 = vld [vmem:[#allocation9 + $0x568] sm:$0xff]  ;;  %v524_v27 = vld [vmem:[#allocation9 + $0x578] sm:$0xff]  ;;  %v521_v29 = vld [vmem:[#allocation9 + $0x560] sm:$0xff] }
 0x17b   : > { %2172 = vmatpush1.bf16.msra.mxu1 %v2171_v12  ;;  %2102 = vmatprep.subr.bf16.mxu0 %v2101_v13  ;;  %v2105_v26 = vpack.c.bf16 %v522_v23, %v518_v22  ;;  %v2177_v30 = vpack.c.bf16 %v524_v27, %v520_v24  ;;  %v519_v31 = vld [vmem:[#allocation9 + $0x550] sm:$0xff]  ;;  %v526_v36 = vld [vmem:[#allocation9 + $0x588] sm:$0xff]  ;;  %v528_v39 = vld [vmem:[#allocation9 + $0x598] sm:$0xff]  ;;  %v2107_v41 = vpack.c.bf16 %v521_v29, %v517_v28 }
 0x17c   : > { %2174 = vmatprep.subr.bf16.mxu1 %v2173_v17  ;;  %v523_v32 = vld [vmem:[#allocation9 + $0x570] sm:$0xff]  ;;  %v530_v38 = vld [vmem:[#allocation9 + $0x5a8] sm:$0xff]  ;;  %v532_v40 = vld [vmem:[#allocation9 + $0x5b8] sm:$0xff] }
 0x17d   : > { %v2179_v42 = vpack.c.bf16 %v523_v32, %v519_v31  ;;  %v2109_v43 = vpack.c.bf16 %v530_v38, %v526_v36  ;;  %v525_v44 = vld [vmem:[#allocation9 + $0x580] sm:$0xff]  ;;  %v527_v46 = vld [vmem:[#allocation9 + $0x590] sm:$0xff]  ;;  %v2181_v47 = vpack.c.bf16 %v532_v40, %v528_v39  ;;  %v534_v49 = vld [vmem:[#allocation9 + $0x5c8] sm:$0xff] }
 0x17e   : > { %2104 = vmatpush1.bf16.msra.mxu0 %v2103_v21  ;;  %v529_v45 = vld [vmem:[#allocation9 + $0x5a0] sm:$0xff]  ;;  %v531_v48 = vld [vmem:[#allocation9 + $0x5b0] sm:$0xff]  ;;  %v538_v50 = vld [vmem:[#allocation9 + $0x5e8] sm:$0xff] }
 0x17f   : > { %2176 = vmatpush1.bf16.msra.mxu1 %v2175_v25  ;;  %2106 = vmatprep.subr.bf16.mxu0 %v2105_v26  ;;  %v536_v51 = vld [vmem:[#allocation9 + $0x5d8] sm:$0xff]  ;;  %v2111_v53 = vpack.c.bf16 %v529_v45, %v525_v44  ;;  %v2183_v54 = vpack.c.bf16 %v531_v48, %v527_v46  ;;  %v2113_v55 = vpack.c.bf16 %v538_v50, %v534_v49  ;;  %v533_v56 = vld [vmem:[#allocation9 + $0x5c0] sm:$0xff]  ;;  %v535_v58 = vld [vmem:[#allocation9 + $0x5d0] sm:$0xff] }
 0x180   : > { %2178 = vmatprep.subr.bf16.mxu1 %v2177_v30  ;;  %v540_v52 = vld [vmem:[#allocation9 + $0x5f8] sm:$0xff]  ;;  %v537_v57 = vld [vmem:[#allocation9 + $0x5e0] sm:$0xff]  ;;  %v539_v60 = vld [vmem:[#allocation9 + $0x5f0] sm:$0xff] }
 0x181   : > { %v2185_v59 = vpack.c.bf16 %v540_v52, %v536_v51  ;;  %v542_v61 = vld [vmem:[#allocation9 + $0x608] sm:$0xff]  ;;  %v544_v63 = vld [vmem:[#allocation9 + $0x618] sm:$0xff]  ;;  %v2115_v1 = vpack.c.bf16 %v537_v57, %v533_v56  ;;  %v2187_v2 = vpack.c.bf16 %v539_v60, %v535_v58  ;;  %v541_v4 = vld [vmem:[#allocation9 + $0x600] sm:$0xff] }
 0x182   : > { %2108 = vmatpush1.bf16.msra.mxu0 %v2107_v41  ;;  %v546_v62 = vld [vmem:[#allocation9 + $0x628] sm:$0xff]  ;;  %v548_v0 = vld [vmem:[#allocation9 + $0x638] sm:$0xff]  ;;  %v545_v5 = vld [vmem:[#allocation9 + $0x620] sm:$0xff] }
 0x183   : > { %2180 = vmatpush1.bf16.msra.mxu1 %v2179_v42  ;;  %2110 = vmatprep.subr.bf16.mxu0 %v2109_v43  ;;  %v2117_v3 = vpack.c.bf16 %v546_v62, %v542_v61  ;;  %v543_v6 = vld [vmem:[#allocation9 + $0x610] sm:$0xff]  ;;  %v2189_v7 = vpack.c.bf16 %v548_v0, %v544_v63  ;;  %v550_v9 = vld [vmem:[#allocation9 + $0x648] sm:$0xff]  ;;  %v552_v11 = vld [vmem:[#allocation9 + $0x658] sm:$0xff]  ;;  %v2119_v13 = vpack.c.bf16 %v545_v5, %v541_v4 }
 0x184   : > { %2182 = vmatprep.subr.bf16.mxu1 %v2181_v47  ;;  %v547_v8 = vld [vmem:[#allocation9 + $0x630] sm:$0xff]  ;;  %v554_v10 = vld [vmem:[#allocation9 + $0x668] sm:$0xff]  ;;  %v556_v12 = vld [vmem:[#allocation9 + $0x678] sm:$0xff] }
 0x185   : > { %v2191_v14 = vpack.c.bf16 %v547_v8, %v543_v6  ;;  %v2121_v15 = vpack.c.bf16 %v554_v10, %v550_v9  ;;  %v549_v16 = vld [vmem:[#allocation9 + $0x640] sm:$0xff]  ;;  %v551_v18 = vld [vmem:[#allocation9 + $0x650] sm:$0xff]  ;;  %v2193_v19 = vpack.c.bf16 %v556_v12, %v552_v11  ;;  %v558_v21 = vld [vmem:[#allocation9 + $0x688] sm:$0xff] }
 0x186   : > { %2112 = vmatpush1.bf16.msra.mxu0 %v2111_v53  ;;  %v553_v17 = vld [vmem:[#allocation9 + $0x660] sm:$0xff]  ;;  %v555_v20 = vld [vmem:[#allocation9 + $0x670] sm:$0xff]  ;;  %v562_v22 = vld [vmem:[#allocation9 + $0x6a8] sm:$0xff] }
 0x187   : > { %2184 = vmatpush1.bf16.msra.mxu1 %v2183_v54  ;;  %2114 = vmatprep.subr.bf16.mxu0 %v2113_v55  ;;  %v560_v23 = vld [vmem:[#allocation9 + $0x698] sm:$0xff]  ;;  %v2123_v25 = vpack.c.bf16 %v553_v17, %v549_v16  ;;  %v2195_v26 = vpack.c.bf16 %v555_v20, %v551_v18  ;;  %v2125_v27 = vpack.c.bf16 %v562_v22, %v558_v21  ;;  %v557_v28 = vld [vmem:[#allocation9 + $0x680] sm:$0xff]  ;;  %v559_v30 = vld [vmem:[#allocation9 + $0x690] sm:$0xff] }
 0x188   : > { %2186 = vmatprep.subr.bf16.mxu1 %v2185_v59  ;;  %v564_v24 = vld [vmem:[#allocation9 + $0x6b8] sm:$0xff]  ;;  %v561_v29 = vld [vmem:[#allocation9 + $0x6a0] sm:$0xff]  ;;  %v563_v32 = vld [vmem:[#allocation9 + $0x6b0] sm:$0xff] }
 0x189   : > { %v2197_v31 = vpack.c.bf16 %v564_v24, %v560_v23  ;;  %v566_v36 = vld [vmem:[#allocation9 + $0x6c8] sm:$0xff]  ;;  %v568_v39 = vld [vmem:[#allocation9 + $0x6d8] sm:$0xff]  ;;  %v2127_v41 = vpack.c.bf16 %v561_v29, %v557_v28  ;;  %v2199_v42 = vpack.c.bf16 %v563_v32, %v559_v30  ;;  %v565_v44 = vld [vmem:[#allocation9 + $0x6c0] sm:$0xff] }
 0x18a   : > { %2116 = vmatpush1.bf16.msra.mxu0 %v2115_v1  ;;  %v570_v38 = vld [vmem:[#allocation9 + $0x6e8] sm:$0xff]  ;;  %v572_v40 = vld [vmem:[#allocation9 + $0x6f8] sm:$0xff]  ;;  %v569_v45 = vld [vmem:[#allocation9 + $0x6e0] sm:$0xff] }
 0x18b   : > { %2188 = vmatpush1.bf16.msra.mxu1 %v2187_v2  ;;  %2118 = vmatprep.subr.bf16.mxu0 %v2117_v3  ;;  %v2129_v43 = vpack.c.bf16 %v570_v38, %v566_v36  ;;  %v567_v46 = vld [vmem:[#allocation9 + $0x6d0] sm:$0xff]  ;;  %v2201_v47 = vpack.c.bf16 %v572_v40, %v568_v39  ;;  %v574_v49 = vld [vmem:[#allocation9 + $0x708] sm:$0xff]  ;;  %v576_v51 = vld [vmem:[#allocation9 + $0x718] sm:$0xff]  ;;  %v2131_v53 = vpack.c.bf16 %v569_v45, %v565_v44 }
 0x18c   : > { %2190 = vmatprep.subr.bf16.mxu1 %v2189_v7  ;;  %v571_v48 = vld [vmem:[#allocation9 + $0x6f0] sm:$0xff]  ;;  %v578_v50 = vld [vmem:[#allocation9 + $0x728] sm:$0xff]  ;;  %v580_v52 = vld [vmem:[#allocation9 + $0x738] sm:$0xff] }
 0x18d   : > { %v2203_v54 = vpack.c.bf16 %v571_v48, %v567_v46  ;;  %v2133_v55 = vpack.c.bf16 %v578_v50, %v574_v49  ;;  %v573_v56 = vld [vmem:[#allocation9 + $0x700] sm:$0xff]  ;;  %v575_v58 = vld [vmem:[#allocation9 + $0x710] sm:$0xff]  ;;  %v2205_v59 = vpack.c.bf16 %v580_v52, %v576_v51  ;;  %v582_v61 = vld [vmem:[#allocation9 + $0x748] sm:$0xff] }
 0x18e   : > { %2120 = vmatpush1.bf16.msra.mxu0 %v2119_v13  ;;  %v577_v57 = vld [vmem:[#allocation9 + $0x720] sm:$0xff]  ;;  %v579_v60 = vld [vmem:[#allocation9 + $0x730] sm:$0xff]  ;;  %v586_v62 = vld [vmem:[#allocation9 + $0x768] sm:$0xff] }
 0x18f   : > { %2192 = vmatpush1.bf16.msra.mxu1 %v2191_v14  ;;  %2122 = vmatprep.subr.bf16.mxu0 %v2121_v15  ;;  %v584_v63 = vld [vmem:[#allocation9 + $0x758] sm:$0xff]  ;;  %v2135_v1 = vpack.c.bf16 %v577_v57, %v573_v56  ;;  %v581_v2 = vld [vmem:[#allocation9 + $0x740] sm:$0xff]  ;;  %v2207_v3 = vpack.c.bf16 %v579_v60, %v575_v58  ;;  %v2137_v4 = vpack.c.bf16 %v586_v62, %v582_v61  ;;  %v583_v6 = vld [vmem:[#allocation9 + $0x750] sm:$0xff] }
 0x190   : > { %2194 = vmatprep.subr.bf16.mxu1 %v2193_v19  ;;  %v588_v0 = vld [vmem:[#allocation9 + $0x778] sm:$0xff]  ;;  %v585_v5 = vld [vmem:[#allocation9 + $0x760] sm:$0xff]  ;;  %v587_v7 = vld [vmem:[#allocation9 + $0x770] sm:$0xff] }
 0x191   : > { %v2209_v8 = vpack.c.bf16 %v588_v0, %v584_v63  ;;  %v590_v9 = vld [vmem:[#allocation9 + $0x788] sm:$0xff]  ;;  %v1964_v11 = vld [vmem:[%s3018_s11 + $0x20] sm:$0xff]  ;;  %v2139_v14 = vpack.c.bf16 %v585_v5, %v581_v2  ;;  %v2211_v15 = vpack.c.bf16 %v587_v7, %v583_v6  ;;  %v589_v17 = vld [vmem:[#allocation9 + $0x780] sm:$0xff] }
 0x192   : > { %2124 = vmatpush1.bf16.msra.mxu0 %v2123_v25  ;;  %v594_v10 = vld [vmem:[#allocation9 + $0x7a8] sm:$0xff]  ;;  %v592_v12 = vld [vmem:[#allocation9 + $0x798] sm:$0xff]  ;;  %704 = vmatprep.mubr.f32.mxu0 %v1964_v11  ;;  %v593_v18 = vld [vmem:[#allocation9 + $0x7a0] sm:$0xff] }
 0x193   : > { %2196 = vmatpush1.bf16.msra.mxu1 %v2195_v26  ;;  %2126 = vmatprep.subr.bf16.mxu0 %v2125_v27  ;;  %v596_v13 = vld [vmem:[#allocation9 + $0x7b8] sm:$0xff]  ;;  %v2141_v16 = vpack.c.bf16 %v594_v10, %v590_v9  ;;  %v591_v19 = vld [vmem:[#allocation9 + $0x790] sm:$0xff]  ;;  %v598_v22 = vld [vmem:[#allocation9 + $0x7c8] sm:$0xff]  ;;  %v2143_v26 = vpack.c.bf16 %v593_v18, %v589_v17 }
 0x194   : > { %2198 = vmatprep.subr.bf16.mxu1 %v2197_v31  ;;  %846 = vmatprep.mubr.f32.mxu1 %v1964_v11  ;;  %v2213_v20 = vpack.c.bf16 %v596_v13, %v592_v12  ;;  %v595_v21 = vld [vmem:[#allocation9 + $0x7b0] sm:$0xff]  ;;  %v602_v23 = vld [vmem:[#allocation9 + $0x7e8] sm:$0xff]  ;;  %v600_v24 = vld [vmem:[#allocation9 + $0x7d8] sm:$0xff] }
 0x195   : > { %v604_v25 = vld [vmem:[#allocation9 + $0x7f8] sm:$0xff]  ;;  %v2215_v27 = vpack.c.bf16 %v595_v21, %v591_v19  ;;  %v2145_v28 = vpack.c.bf16 %v602_v23, %v598_v22  ;;  %v597_v29 = vld [vmem:[#allocation9 + $0x7c0] sm:$0xff]  ;;  %v599_v31 = vld [vmem:[#allocation9 + $0x7d0] sm:$0xff] }
 0x196   : > { %2128 = vmatpush1.bf16.msra.mxu0 %v2127_v41  ;;  %v601_v30 = vld [vmem:[#allocation9 + $0x7e0] sm:$0xff]  ;;  %v2217_v32 = vpack.c.bf16 %v604_v25, %v600_v24  ;;  %v603_v36 = vld [vmem:[#allocation9 + $0x7f0] sm:$0xff]  ;;  %v606_v38 = vld [vmem:[#allocation9 + $0x808] sm:$0xff] }
 0x197   : > { %2200 = vmatpush1.bf16.msra.mxu1 %v2199_v42  ;;  %2130 = vmatprep.subr.bf16.mxu0 %v2129_v43  ;;  %v610_v39 = vld [vmem:[#allocation9 + $0x828] sm:$0xff]  ;;  %v608_v40 = vld [vmem:[#allocation9 + $0x818] sm:$0xff]  ;;  %v2147_v42 = vpack.c.bf16 %v601_v30, %v597_v29  ;;  %v2219_v43 = vpack.c.bf16 %v603_v36, %v599_v31  ;;  %v605_v45 = vld [vmem:[#allocation9 + $0x800] sm:$0xff]  ;;  %v2838_v36 = vmov 0.0  }
 0x198   : > { %2202 = vmatprep.subr.bf16.mxu1 %v2201_v47  ;;  %v612_v41 = vld [vmem:[#allocation9 + $0x838] sm:$0xff]  ;;  %v2149_v44 = vpack.c.bf16 %v610_v39, %v606_v38  ;;  %v609_v46 = vld [vmem:[#allocation9 + $0x820] sm:$0xff]  ;;  %v607_v47 = vld [vmem:[#allocation9 + $0x810] sm:$0xff] }
 0x199   : > { %v2221_v48 = vpack.c.bf16 %v612_v41, %v608_v40  ;;  %v611_v49 = vld [vmem:[#allocation9 + $0x830] sm:$0xff]  ;;  %v614_v50 = vld [vmem:[#allocation9 + $0x848] sm:$0xff]  ;;  %v616_v52 = vld [vmem:[#allocation9 + $0x858] sm:$0xff] }
 0x19a   : > { %2132 = vmatpush1.bf16.msra.mxu0 %v2131_v53  ;;  %v618_v51 = vld [vmem:[#allocation9 + $0x868] sm:$0xff]  ;;  %v620_v53 = vld [vmem:[#allocation9 + $0x878] sm:$0xff]  ;;  %v613_v57 = vld [vmem:[#allocation9 + $0x840] sm:$0xff] }
 0x19b   : > { %2204 = vmatpush1.bf16.msra.mxu1 %v2203_v54  ;;  %2134 = vmatprep.subr.bf16.mxu0 %v2133_v55  ;;  %v2151_v54 = vpack.c.bf16 %v609_v46, %v605_v45  ;;  %v2223_v55 = vpack.c.bf16 %v611_v49, %v607_v47  ;;  %v2153_v56 = vpack.c.bf16 %v618_v51, %v614_v50  ;;  %v617_v58 = vld [vmem:[#allocation9 + $0x860] sm:$0xff]  ;;  %v619_v61 = vld [vmem:[#allocation9 + $0x870] sm:$0xff]  ;;  %v622_v62 = vld [vmem:[#allocation9 + $0x888] sm:$0xff] }
 0x19c   : > { %2206 = vmatprep.subr.bf16.mxu1 %v2205_v59  ;;  %v615_v59 = vld [vmem:[#allocation9 + $0x850] sm:$0xff]  ;;  %v2225_v60 = vpack.c.bf16 %v620_v53, %v616_v52  ;;  %v626_v63 = vld [vmem:[#allocation9 + $0x8a8] sm:$0xff]  ;;  %v624_v0 = vld [vmem:[#allocation9 + $0x898] sm:$0xff]  ;;  %v2155_v2 = vpack.c.bf16 %v617_v58, %v613_v57 }
 0x19d   : > { %v621_v5 = vld [vmem:[#allocation9 + $0x880] sm:$0xff]  ;;  %v623_v7 = vld [vmem:[#allocation9 + $0x890] sm:$0xff]  ;;  %v630_v10 = vld [vmem:[#allocation9 + $0x8c8] sm:$0xff] }
 0x19e   : > { %2136 = vmatpush1.bf16.msra.mxu0 %v2135_v1  ;;  %v628_v1 = vld [vmem:[#allocation9 + $0x8b8] sm:$0xff]  ;;  %v625_v6 = vld [vmem:[#allocation9 + $0x8a0] sm:$0xff]  ;;  %v627_v9 = vld [vmem:[#allocation9 + $0x8b0] sm:$0xff] }
 0x19f   : > { %2208 = vmatpush1.bf16.msra.mxu1 %v2207_v3  ;;  %2138 = vmatprep.subr.bf16.mxu0 %v2137_v4  ;;  %v2227_v3 = vpack.c.bf16 %v619_v61, %v615_v59  ;;  %v2157_v4 = vpack.c.bf16 %v626_v63, %v622_v62  ;;  %v634_v11 = vld [vmem:[#allocation9 + $0x8e8] sm:$0xff]  ;;  %v632_v12 = vld [vmem:[#allocation9 + $0x8d8] sm:$0xff]  ;;  %v629_v18 = vld [vmem:[#allocation9 + $0x8c0] sm:$0xff] }
 0x1a0   : > { %2210 = vmatprep.subr.bf16.mxu1 %v2209_v8  ;;  %v2229_v8 = vpack.c.bf16 %v628_v1, %v624_v0  ;;  %v636_v13 = vld [vmem:[#allocation9 + $0x8f8] sm:$0xff]  ;;  %v2161_v17 = vpack.c.bf16 %v634_v11, %v630_v10  ;;  %v633_v19 = vld [vmem:[#allocation9 + $0x8e0] sm:$0xff]  ;;  %v635_v22 = vld [vmem:[#allocation9 + $0x8f0] sm:$0xff] }
 0x1a1   : > { %v2233_v21 = vpack.c.bf16 %v636_v13, %v632_v12  ;;  %v342_v23 = vld [vmem:[#allocation9 + $0x8] sm:$0xff]  ;;  %v344_v25 = vld [vmem:[#allocation9 + $0x18] sm:$0xff]  ;;  %v341_v30 = vld [vmem:[#allocation9] sm:$0xff] }
 0x1a2   : > { %2140 = vmatpush1.bf16.msra.mxu0 %v2139_v14  ;;  %v1963_v14 = vld [vmem:[%s3018_s11 + $0x18] sm:$0xff]  ;;  %v345_v31 = vld [vmem:[#allocation9 + $0x20] sm:$0xff] }
 0x1a3   : > { %2212 = vmatpush1.bf16.msra.mxu1 %v2211_v15  ;;  %2142 = vmatprep.subr.bf16.mxu0 %v2141_v16  ;;  %v2159_v15 = vpack.c.bf16 %v625_v6, %v621_v5  ;;  %v2231_v16 = vpack.c.bf16 %v627_v9, %v623_v7  ;;  %v346_v24 = vld [vmem:[#allocation9 + $0x28] sm:$0xff]  ;;  %v347_v39 = vld [vmem:[#allocation9 + $0x30] sm:$0xff]  ;;  %v2239_v45 = vpack.c.bf16 %v345_v31, %v341_v30  ;;  %v353_v49 = vld [vmem:[#allocation9 + $0x60] sm:$0xff] }
 0x1a4   : > { %2214 = vmatprep.subr.bf16.mxu1 %v2213_v20  ;;  %v631_v20 = vld [vmem:[#allocation9 + $0x8d0] sm:$0xff]  ;;  %v2237_v29 = vpack.c.bf16 %v346_v24, %v342_v23  ;;  %v350_v40 = vld [vmem:[#allocation9 + $0x48] sm:$0xff]  ;;  %v361_v61 = vld [vmem:[#allocation9 + $0xa0] sm:$0xff] }
 0x1a5   : > { %v354_v41 = vld [vmem:[#allocation9 + $0x68] sm:$0xff]  ;;  %v351_v50 = vld [vmem:[#allocation9 + $0x50] sm:$0xff]  ;;  %v369_v9 = vld [vmem:[#allocation9 + $0xe0] sm:$0xff] }
 0x1a6   : > { %2144 = vmatpush1.bf16.msra.mxu0 %v2143_v26  ;;  %v348_v26 = vld [vmem:[#allocation9 + $0x38] sm:$0xff]  ;;  %v2241_v47 = vpack.c.bf16 %v354_v41, %v350_v40  ;;  %v355_v52 = vld [vmem:[#allocation9 + $0x70] sm:$0xff]  ;;  %v358_v53 = vld [vmem:[#allocation9 + $0x88] sm:$0xff] }
 0x1a7   : > { %2216 = vmatpush1.bf16.msra.mxu1 %v2215_v27  ;;  %2146 = vmatprep.subr.bf16.mxu0 %v2145_v28  ;;  %v2163_v27 = vpack.c.bf16 %v633_v19, %v629_v18  ;;  %v2235_v28 = vpack.c.bf16 %v635_v22, %v631_v20  ;;  %v2309_v38 = vpack.c.bf16 %v348_v26, %v344_v25  ;;  %v359_v62 = vld [vmem:[#allocation9 + $0x90] sm:$0xff]  ;;  %v366_v1 = vld [vmem:[#allocation9 + $0xc8] sm:$0xff]  ;;  %v373_v20 = vld [vmem:[#allocation9 + $0x100] sm:$0xff] }
 0x1a8   : > { %2218 = vmatprep.subr.bf16.mxu1 %v2217_v32  ;;  %v343_v32 = vld [vmem:[#allocation9 + $0x10] sm:$0xff]  ;;  %v2315_v58 = vpack.c.bf16 %v355_v52, %v351_v50  ;;  %v374_v13 = vld [vmem:[#allocation9 + $0x108] sm:$0xff]  ;;  %v389_v50 = vld [vmem:[#allocation9 + $0x180] sm:$0xff] }
 0x1a9   : > { %v2311_v46 = vpack.c.bf16 %v347_v39, %v343_v32  ;;  %v363_v0 = vld [vmem:[#allocation9 + $0xb0] sm:$0xff]  ;;  %v382_v25 = vld [vmem:[#allocation9 + $0x148] sm:$0xff]  ;;  %v381_v32 = vld [vmem:[#allocation9 + $0x140] sm:$0xff] }
 0x1aa   : > { %2148 = vmatpush1.bf16.msra.mxu0 %v2147_v42  ;;  %v352_v42 = vld [vmem:[#allocation9 + $0x58] sm:$0xff]  ;;  %v2319_v6 = vpack.c.bf16 %v363_v0, %v359_v62  ;;  %v367_v10 = vld [vmem:[#allocation9 + $0xd0] sm:$0xff]  ;;  %v386_v26 = vld [vmem:[#allocation9 + $0x168] sm:$0xff] }
 0x1ab   : > { %2220 = vmatpush1.bf16.msra.mxu1 %v2219_v43  ;;  %2150 = vmatprep.subr.bf16.mxu0 %v2149_v44  ;;  %v356_v43 = vld [vmem:[#allocation9 + $0x78] sm:$0xff]  ;;  %v371_v12 = vld [vmem:[#allocation9 + $0xf0] sm:$0xff]  ;;  %v2257_v31 = vpack.c.bf16 %v386_v26, %v382_v25  ;;  %v397_v62 = vld [vmem:[#allocation9 + $0x1c0] sm:$0xff] }
 0x1ac   : > { %2222 = vmatprep.subr.bf16.mxu1 %v2221_v48  ;;  %v1965_v44 = vld [vmem:[%s3018_s11 + $0x28] sm:$0xff]  ;;  %v2313_v51 = vpack.c.bf16 %v356_v43, %v352_v42  ;;  %v2323_v18 = vpack.c.bf16 %v371_v12, %v367_v10  ;;  %v375_v22 = vld [vmem:[#allocation9 + $0x110] sm:$0xff]  ;;  %v390_v42 = vld [vmem:[#allocation9 + $0x188] sm:$0xff] }
 0x1ad   : > { %v349_v48 = vld [vmem:[#allocation9 + $0x40] sm:$0xff]  ;;  %v379_v24 = vld [vmem:[#allocation9 + $0x130] sm:$0xff]  ;;  %v394_v43 = vld [vmem:[#allocation9 + $0x1a8] sm:$0xff] }
 0x1ae   : > { %2152 = vmatpush1.bf16.msra.mxu0 %v2151_v54  ;;  %v362_v54 = vld [vmem:[#allocation9 + $0xa8] sm:$0xff]  ;;  %v2243_v57 = vpack.c.bf16 %v353_v49, %v349_v48  ;;  %v2327_v30 = vpack.c.bf16 %v379_v24, %v375_v22  ;;  %v383_v39 = vld [vmem:[#allocation9 + $0x150] sm:$0xff]  ;;  %v2261_v49 = vpack.c.bf16 %v394_v43, %v390_v42  ;;  %v405_v10 = vld [vmem:[#allocation9 + $0x200] sm:$0xff] }
 0x1af   : > { %2224 = vmatpush1.bf16.msra.mxu1 %v2223_v55  ;;  %2154 = vmatprep.subr.bf16.mxu0 %v2153_v56  ;;  %v360_v55 = vld [vmem:[#allocation9 + $0x98] sm:$0xff]  ;;  %v2245_v59 = vpack.c.bf16 %v362_v54, %v358_v53  ;;  %v387_v41 = vld [vmem:[#allocation9 + $0x170] sm:$0xff]  ;;  %v413_v22 = vld [vmem:[#allocation9 + $0x240] sm:$0xff] }
 0x1b0   : > { %2226 = vmatprep.subr.bf16.mxu1 %v2225_v60  ;;  %v364_v56 = vld [vmem:[#allocation9 + $0xb8] sm:$0xff]  ;;  %v357_v60 = vld [vmem:[#allocation9 + $0x80] sm:$0xff]  ;;  %v2331_v48 = vpack.c.bf16 %v387_v41, %v383_v39  ;;  %v391_v52 = vld [vmem:[#allocation9 + $0x190] sm:$0xff] }
 0x1b1   : > { %v2317_v63 = vpack.c.bf16 %v364_v56, %v360_v55  ;;  %v2247_v5 = vpack.c.bf16 %v361_v61, %v357_v60  ;;  %v395_v54 = vld [vmem:[#allocation9 + $0x1b0] sm:$0xff]  ;;  %v398_v55 = vld [vmem:[#allocation9 + $0x1c8] sm:$0xff]  ;;  %v421_v39 = vld [vmem:[#allocation9 + $0x280] sm:$0xff] }
 0x1b2   : > { %2156 = vmatpush1.bf16.msra.mxu0 %v2155_v2  ;;  %v370_v2 = vld [vmem:[#allocation9 + $0xe8] sm:$0xff]  ;;  %v2335_v60 = vpack.c.bf16 %v395_v54, %v391_v52  ;;  %v399_v0 = vld [vmem:[#allocation9 + $0x1d0] sm:$0xff]  ;;  %v433_v52 = vld [vmem:[#allocation9 + $0x2e0] sm:$0xff] }
 0x1b3   : > { %2228 = vmatpush1.bf16.msra.mxu1 %v2227_v3  ;;  %2158 = vmatprep.subr.bf16.mxu0 %v2157_v4  ;;  %v368_v3 = vld [vmem:[#allocation9 + $0xd8] sm:$0xff]  ;;  %v2249_v7 = vpack.c.bf16 %v370_v2, %v366_v1  ;;  %v402_v56 = vld [vmem:[#allocation9 + $0x1e8] sm:$0xff]  ;;  %v403_v2 = vld [vmem:[#allocation9 + $0x1f0] sm:$0xff] }
 0x1b4   : > { %2230 = vmatprep.subr.bf16.mxu1 %v2229_v8  ;;  %v372_v4 = vld [vmem:[#allocation9 + $0xf8] sm:$0xff]  ;;  %v365_v8 = vld [vmem:[#allocation9 + $0xc0] sm:$0xff]  ;;  %v2265_v61 = vpack.c.bf16 %v402_v56, %v398_v55  ;;  %v407_v12 = vld [vmem:[#allocation9 + $0x210] sm:$0xff] }
 0x1b5   : > { %705 = vmatmul.mubr.f32.vlgmr.msra.gmra.mrb[0].mxu0 %v1963_v14  ;;  %v2321_v11 = vpack.c.bf16 %v372_v4, %v368_v3  ;;  %v406_v3 = vld [vmem:[#allocation9 + $0x208] sm:$0xff]  ;;  %v415_v24 = vld [vmem:[#allocation9 + $0x250] sm:$0xff] }
 0x1b6   : > { %2160 = vmatpush1.bf16.msra.mxu0 %v2159_v15  ;;  %847 = vmatmul.mubr.f32.vlgmr.msra.gmra.mrb[0].mxu1 %v1963_v14  ;;  %v378_v14 = vld [vmem:[#allocation9 + $0x128] sm:$0xff]  ;;  %v376_v15 = vld [vmem:[#allocation9 + $0x118] sm:$0xff]  ;;  %v419_v26 = vld [vmem:[#allocation9 + $0x270] sm:$0xff] }
 0x1b7   : > { %2232 = vmatpush1.bf16.msra.mxu1 %v2231_v16  ;;  %2162 = vmatprep.subr.bf16.mxu0 %v2161_v17  ;;  %v380_v16 = vld [vmem:[#allocation9 + $0x138] sm:$0xff]  ;;  %v2251_v17 = vpack.c.bf16 %v369_v9, %v365_v8  ;;  %v2253_v19 = vpack.c.bf16 %v378_v14, %v374_v13  ;;  %v410_v4 = vld [vmem:[#allocation9 + $0x228] sm:$0xff]  ;;  %v2339_v8 = vpack.c.bf16 %v403_v2, %v399_v0  ;;  %v411_v14 = vld [vmem:[#allocation9 + $0x230] sm:$0xff] }
 0x1b8   : > { %2234 = vmatprep.subr.bf16.mxu1 %v2233_v21  ;;  %775 = vmatprep.mubr.f32.mxu0 %v2838_v36  ;;  %v377_v21 = vld [vmem:[#allocation9 + $0x120] sm:$0xff]  ;;  %v2325_v23 = vpack.c.bf16 %v380_v16, %v376_v15  ;;  %v2269_v9 = vpack.c.bf16 %v410_v4, %v406_v3  ;;  %v414_v15 = vld [vmem:[#allocation9 + $0x248] sm:$0xff]  ;;  %v423_v41 = vld [vmem:[#allocation9 + $0x290] sm:$0xff] }
 0x1b9   : > { %917 = vmatprep.mubr.f32.mxu1 %v2838_v36  ;;  %v418_v16 = vld [vmem:[#allocation9 + $0x268] sm:$0xff]  ;;  %v427_v43 = vld [vmem:[#allocation9 + $0x2b0] sm:$0xff]  ;;  %v441_v0 = vld [vmem:[#allocation9 + $0x320] sm:$0xff] }
 0x1ba   : > { %2164 = vmatpush1.bf16.msra.mxu0 %v2163_v27  ;;  %v384_v27 = vld [vmem:[#allocation9 + $0x158] sm:$0xff]  ;;  %v435_v55 = vld [vmem:[#allocation9 + $0x2f0] sm:$0xff]  ;;  %v438_v56 = vld [vmem:[#allocation9 + $0x308] sm:$0xff] }
 0x1bb   : > { %2236 = vmatpush1.bf16.msra.mxu1 %v2235_v28  ;;  %2238 = vmatprep.subr.bf16.mxu0 %v2237_v29  ;;  %v388_v28 = vld [vmem:[#allocation9 + $0x178] sm:$0xff]  ;;  %v2255_v29 = vpack.c.bf16 %v377_v21, %v373_v20  ;;  %v2343_v20 = vpack.c.bf16 %v411_v14, %v407_v12  ;;  %v2273_v21 = vpack.c.bf16 %v418_v16, %v414_v15  ;;  %v443_v3 = vld [vmem:[#allocation9 + $0x330] sm:$0xff]  ;;  %v446_v4 = vld [vmem:[#allocation9 + $0x348] sm:$0xff] }
 0x1bc   : > { %2310 = vmatprep.subr.bf16.mxu1 %v2309_v38  ;;  %v385_v38 = vld [vmem:[#allocation9 + $0x160] sm:$0xff]  ;;  %v2329_v40 = vpack.c.bf16 %v388_v28, %v384_v27  ;;  %v422_v27 = vld [vmem:[#allocation9 + $0x288] sm:$0xff]  ;;  %v451_v15 = vld [vmem:[#allocation9 + $0x370] sm:$0xff] }
 0x1bd   : > { %1966 = vmatmul.mubr.msk.f32.vlgmr.msra.gmra.mrb[0].mxu0 %vm123_vm0, %v1965_v44  ;;  %v426_v28 = vld [vmem:[#allocation9 + $0x2a8] sm:$0xff]  ;;  %v449_v12 = vld [vmem:[#allocation9 + $0x360] sm:$0xff] }
 0x1be   : > { %1967 = vmatmul.mubr.msk.f32.vlgmr.msra.gmra.mrb[0].mxu1 %vm123_vm0, %v1965_v44  ;;  %2240 = vmatpush1.bf16.msra.mxu0 %v2239_v45  ;;  %v392_v44 = vld [vmem:[#allocation9 + $0x198] sm:$0xff]  ;;  %v454_v16 = vld [vmem:[#allocation9 + $0x388] sm:$0xff] }
 0x1bf   : > { %2312 = vmatpush1.bf16.msra.mxu1 %v2311_v46  ;;  %2242 = vmatprep.subr.bf16.mxu0 %v2241_v47  ;;  %v396_v45 = vld [vmem:[#allocation9 + $0x1b8] sm:$0xff]  ;;  %v2259_v47 = vpack.c.bf16 %v385_v38, %v381_v32  ;;  %v2347_v32 = vpack.c.bf16 %v419_v26, %v415_v24  ;;  %v2277_v38 = vpack.c.bf16 %v426_v28, %v422_v27  ;;  %v457_v24 = vld [vmem:[#allocation9 + $0x3a0] sm:$0xff]  ;;  %v459_v27 = vld [vmem:[#allocation9 + $0x3b0] sm:$0xff] }
 0x1c0   : > { %2314 = vmatprep.subr.bf16.mxu1 %v2313_v51  ;;  %v339_v46 = vld [vmem:[%s3018_s11 + $0x8] sm:$0xff]  ;;  %v2333_v53 = vpack.c.bf16 %v396_v45, %v392_v44  ;;  %v430_v44 = vld [vmem:[#allocation9 + $0x2c8] sm:$0xff] }
 0x1c1   : > { %991 = vmatprep.mubr.f32.mxu0 %v339_v46  ;;  %v393_v51 = vld [vmem:[#allocation9 + $0x1a0] sm:$0xff]  ;;  %1133 = vmatprep.mubr.f32.mxu1 %v339_v46  ;;  %v434_v45 = vld [vmem:[#allocation9 + $0x2e8] sm:$0xff]  ;;  %v432_v46 = vld [vmem:[#allocation9 + $0x2d8] sm:$0xff] }
 0x1c2   : > { %2244 = vmatpush1.bf16.msra.mxu0 %v2243_v57  ;;  %v400_v57 = vld [vmem:[#allocation9 + $0x1d8] sm:$0xff]  ;;  %v462_v28 = vld [vmem:[#allocation9 + $0x3c8] sm:$0xff] }
 0x1c3   : > { %2316 = vmatpush1.bf16.msra.mxu1 %v2315_v58  ;;  %2246 = vmatprep.subr.bf16.mxu0 %v2245_v59  ;;  %v404_v58 = vld [vmem:[#allocation9 + $0x1f8] sm:$0xff]  ;;  %v2263_v59 = vpack.c.bf16 %v393_v51, %v389_v50  ;;  %v2281_v50 = vpack.c.bf16 %v434_v45, %v430_v44  ;;  %v429_v51 = vld [vmem:[#allocation9 + $0x2c0] sm:$0xff]  ;;  %v467_v44 = vld [vmem:[#allocation9 + $0x3f0] sm:$0xff] }
 0x1c4   : > { %2318 = vmatprep.subr.bf16.mxu1 %v2317_v63  ;;  %v401_v63 = vld [vmem:[#allocation9 + $0x1e0] sm:$0xff]  ;;  %v2337_v1 = vpack.c.bf16 %v404_v58, %v400_v57  ;;  %v442_v57 = vld [vmem:[#allocation9 + $0x328] sm:$0xff]  ;;  %v440_v58 = vld [vmem:[#allocation9 + $0x318] sm:$0xff] }
 0x1c5   : > { %v470_v45 = vld [vmem:[#allocation9 + $0x408] sm:$0xff] }
 0x1c6   : > { %2248 = vmatpush1.bf16.msra.mxu0 %v2247_v5  ;;  %v408_v5 = vld [vmem:[#allocation9 + $0x218] sm:$0xff] }
 0x1c7   : > { %2320 = vmatpush1.bf16.msra.mxu1 %v2319_v6  ;;  %2250 = vmatprep.subr.bf16.mxu0 %v2249_v7  ;;  %v412_v6 = vld [vmem:[#allocation9 + $0x238] sm:$0xff]  ;;  %v2267_v7 = vpack.c.bf16 %v401_v63, %v397_v62  ;;  %v2285_v62 = vpack.c.bf16 %v442_v57, %v438_v56  ;;  %v437_v63 = vld [vmem:[#allocation9 + $0x300] sm:$0xff]  ;;  %v475_v56 = vld [vmem:[#allocation9 + $0x430] sm:$0xff] }
 0x1c8   : > { %2322 = vmatprep.subr.bf16.mxu1 %v2321_v11  ;;  %v409_v11 = vld [vmem:[#allocation9 + $0x220] sm:$0xff]  ;;  %v2341_v13 = vpack.c.bf16 %v412_v6, %v408_v5  ;;  %v450_v5 = vld [vmem:[#allocation9 + $0x368] sm:$0xff]  ;;  %v448_v6 = vld [vmem:[#allocation9 + $0x358] sm:$0xff] }
 0x1c9   : > { %v478_v57 = vld [vmem:[#allocation9 + $0x448] sm:$0xff] }
 0x1ca   : > { %2252 = vmatpush1.bf16.msra.mxu0 %v2251_v17  ;;  %v416_v17 = vld [vmem:[#allocation9 + $0x258] sm:$0xff] }
 0x1cb   : > { %2324 = vmatpush1.bf16.msra.mxu1 %v2323_v18  ;;  %2254 = vmatprep.subr.bf16.mxu0 %v2253_v19  ;;  %v420_v18 = vld [vmem:[#allocation9 + $0x278] sm:$0xff]  ;;  %v2271_v19 = vpack.c.bf16 %v409_v11, %v405_v10  ;;  %v2289_v10 = vpack.c.bf16 %v450_v5, %v446_v4  ;;  %v445_v11 = vld [vmem:[#allocation9 + $0x340] sm:$0xff]  ;;  %v483_v5 = vld [vmem:[#allocation9 + $0x470] sm:$0xff] }
 0x1cc   : > { %2326 = vmatprep.subr.bf16.mxu1 %v2325_v23  ;;  %v417_v23 = vld [vmem:[#allocation9 + $0x260] sm:$0xff]  ;;  %v2345_v25 = vpack.c.bf16 %v420_v18, %v416_v17  ;;  %v458_v17 = vld [vmem:[#allocation9 + $0x3a8] sm:$0xff]  ;;  %v456_v18 = vld [vmem:[#allocation9 + $0x398] sm:$0xff] }
 0x1ce   : > { %2256 = vmatpush1.bf16.msra.mxu0 %v2255_v29  ;;  %v424_v29 = vld [vmem:[#allocation9 + $0x298] sm:$0xff] }
 0x1cf   : > { %2328 = vmatpush1.bf16.msra.mxu1 %v2327_v30  ;;  %2258 = vmatprep.subr.bf16.mxu0 %v2257_v31  ;;  %v428_v30 = vld [vmem:[#allocation9 + $0x2b8] sm:$0xff]  ;;  %v2275_v31 = vpack.c.bf16 %v417_v23, %v413_v22  ;;  %v2293_v22 = vpack.c.bf16 %v458_v17, %v454_v16  ;;  %v453_v23 = vld [vmem:[#allocation9 + $0x380] sm:$0xff]  ;;  %v1225_v17 = vld [vmem:[#allocation9 + $0x930] sm:$0xff] }
 0x1d0   : > { %2330 = vmatprep.subr.bf16.mxu1 %v2329_v40  ;;  %v425_v40 = vld [vmem:[#allocation9 + $0x2a0] sm:$0xff]  ;;  %v2349_v42 = vpack.c.bf16 %v428_v30, %v424_v29  ;;  %v466_v29 = vld [vmem:[#allocation9 + $0x3e8] sm:$0xff]  ;;  %v464_v30 = vld [vmem:[#allocation9 + $0x3d8] sm:$0xff] }
 0x1d2   : > { %2260 = vmatpush1.bf16.msra.mxu0 %v2259_v47  ;;  %v436_v47 = vld [vmem:[#allocation9 + $0x2f8] sm:$0xff] }
 0x1d3   : > { %2332 = vmatpush1.bf16.msra.mxu1 %v2331_v48  ;;  %2262 = vmatprep.subr.bf16.mxu0 %v2261_v49  ;;  %v2279_v48 = vpack.c.bf16 %v425_v40, %v421_v39  ;;  %v2351_v49 = vpack.c.bf16 %v427_v43, %v423_v41  ;;  %v2353_v54 = vpack.c.bf16 %v436_v47, %v432_v46  ;;  %v461_v40 = vld [vmem:[#allocation9 + $0x3c0] sm:$0xff]  ;;  %v474_v46 = vld [vmem:[#allocation9 + $0x428] sm:$0xff]  ;;  %v472_v47 = vld [vmem:[#allocation9 + $0x418] sm:$0xff] }
 0x1d4   : > { %2334 = vmatprep.subr.bf16.mxu1 %v2333_v53  ;;  %v431_v53 = vld [vmem:[#allocation9 + $0x2d0] sm:$0xff]  ;;  %v2297_v39 = vpack.c.bf16 %v466_v29, %v462_v28  ;;  %v465_v41 = vld [vmem:[#allocation9 + $0x3e0] sm:$0xff] }
 0x1d5   : > { %v1229_v28 = vld [vmem:[#allocation9 + $0x950] sm:$0xff] }
 0x1d6   : > { %2264 = vmatpush1.bf16.msra.mxu0 %v2263_v59  ;;  %v444_v59 = vld [vmem:[#allocation9 + $0x338] sm:$0xff] }
 0x1d7   : > { %2336 = vmatpush1.bf16.msra.mxu1 %v2335_v60  ;;  %2266 = vmatprep.subr.bf16.mxu0 %v2265_v61  ;;  %v2283_v60 = vpack.c.bf16 %v433_v52, %v429_v51  ;;  %v2355_v61 = vpack.c.bf16 %v435_v55, %v431_v53  ;;  %v2357_v2 = vpack.c.bf16 %v444_v59, %v440_v58  ;;  %v469_v52 = vld [vmem:[#allocation9 + $0x400] sm:$0xff]  ;;  %v482_v58 = vld [vmem:[#allocation9 + $0x468] sm:$0xff]  ;;  %v480_v59 = vld [vmem:[#allocation9 + $0x458] sm:$0xff] }
 0x1d8   : > { %2338 = vmatprep.subr.bf16.mxu1 %v2337_v1  ;;  %v439_v1 = vld [vmem:[#allocation9 + $0x310] sm:$0xff]  ;;  %v2301_v51 = vpack.c.bf16 %v474_v46, %v470_v45  ;;  %v473_v53 = vld [vmem:[#allocation9 + $0x420] sm:$0xff] }
 0x1d9   : > { %v1239_v45 = vld [vmem:[#allocation9 + $0x9a0] sm:$0xff]  ;;  %v1237_v46 = vld [vmem:[#allocation9 + $0x990] sm:$0xff] }
 0x1da   : > { %2268 = vmatpush1.bf16.msra.mxu0 %v2267_v7  ;;  %v452_v7 = vld [vmem:[#allocation9 + $0x378] sm:$0xff] }
 0x1db   : > { %2340 = vmatpush1.bf16.msra.mxu1 %v2339_v8  ;;  %2270 = vmatprep.subr.bf16.mxu0 %v2269_v9  ;;  %v2287_v8 = vpack.c.bf16 %v441_v0, %v437_v63  ;;  %v2359_v9 = vpack.c.bf16 %v443_v3, %v439_v1  ;;  %v2361_v14 = vpack.c.bf16 %v452_v7, %v448_v6  ;;  %v477_v1 = vld [vmem:[#allocation9 + $0x440] sm:$0xff]  ;;  %v479_v3 = vld [vmem:[#allocation9 + $0x450] sm:$0xff]  ;;  %v1220_v6 = vld [vmem:[#allocation9 + $0x908] sm:$0xff] }
 0x1dc   : > { %2342 = vmatprep.subr.bf16.mxu1 %v2341_v13  ;;  %v447_v13 = vld [vmem:[#allocation9 + $0x350] sm:$0xff]  ;;  %v2305_v0 = vpack.c.bf16 %v482_v58, %v478_v57  ;;  %v1224_v7 = vld [vmem:[#allocation9 + $0x928] sm:$0xff]  ;;  %v1247_v57 = vld [vmem:[#allocation9 + $0x9e0] sm:$0xff] }
 0x1dd   : > { %v1245_v58 = vld [vmem:[#allocation9 + $0x9d0] sm:$0xff] }
 0x1de   : > { %2272 = vmatpush1.bf16.msra.mxu0 %v2271_v19  ;;  %v460_v19 = vld [vmem:[#allocation9 + $0x3b8] sm:$0xff] }
 0x1df   : > { %2344 = vmatpush1.bf16.msra.mxu1 %v2343_v20  ;;  %2274 = vmatprep.subr.bf16.mxu0 %v2273_v21  ;;  %v2291_v20 = vpack.c.bf16 %v449_v12, %v445_v11  ;;  %v2363_v21 = vpack.c.bf16 %v451_v15, %v447_v13  ;;  %v2365_v26 = vpack.c.bf16 %v460_v19, %v456_v18  ;;  %v1219_v13 = vld [vmem:[#allocation9 + $0x900] sm:$0xff]  ;;  %v1221_v15 = vld [vmem:[#allocation9 + $0x910] sm:$0xff]  ;;  %v1228_v18 = vld [vmem:[#allocation9 + $0x948] sm:$0xff] }
 0x1e0   : > { %2346 = vmatprep.subr.bf16.mxu1 %v2345_v25  ;;  %v455_v25 = vld [vmem:[#allocation9 + $0x390] sm:$0xff]  ;;  %v2379_v11 = vpack.c.bf16 %v483_v5, %v479_v3  ;;  %v2381_v12 = vpack.c.bf16 %v1224_v7, %v1220_v6  ;;  %v1232_v19 = vld [vmem:[#allocation9 + $0x968] sm:$0xff]  ;;  %v1255_v5 = vld [vmem:[#allocation9 + $0xa20] sm:$0xff] }
 0x1e1   : > { %v1253_v6 = vld [vmem:[#allocation9 + $0xa10] sm:$0xff] }
 0x1e2   : > { %2276 = vmatpush1.bf16.msra.mxu0 %v2275_v31  ;;  %v468_v31 = vld [vmem:[#allocation9 + $0x3f8] sm:$0xff] }
 0x1e3   : > { %2348 = vmatpush1.bf16.msra.mxu1 %v2347_v32  ;;  %2278 = vmatprep.subr.bf16.mxu0 %v2277_v38  ;;  %v2295_v32 = vpack.c.bf16 %v457_v24, %v453_v23  ;;  %v2367_v38 = vpack.c.bf16 %v459_v27, %v455_v25  ;;  %v2369_v43 = vpack.c.bf16 %v468_v31, %v464_v30  ;;  %v1231_v27 = vld [vmem:[#allocation9 + $0x960] sm:$0xff]  ;;  %v1233_v30 = vld [vmem:[#allocation9 + $0x970] sm:$0xff]  ;;  %v1236_v31 = vld [vmem:[#allocation9 + $0x988] sm:$0xff] }
 0x1e4   : > { %2350 = vmatprep.subr.bf16.mxu1 %v2349_v42  ;;  %v463_v42 = vld [vmem:[#allocation9 + $0x3d0] sm:$0xff]  ;;  %v2455_v24 = vpack.c.bf16 %v1225_v17, %v1221_v15  ;;  %v2385_v25 = vpack.c.bf16 %v1232_v19, %v1228_v18  ;;  %v1263_v17 = vld [vmem:[#allocation9 + $0xa60] sm:$0xff] }
 0x1e5   : > { %v1261_v18 = vld [vmem:[#allocation9 + $0xa50] sm:$0xff] }
 0x1e6   : > { %2280 = vmatpush1.bf16.msra.mxu0 %v2279_v48  ;;  %v476_v48 = vld [vmem:[#allocation9 + $0x438] sm:$0xff] }
 0x1e7   : > { %2352 = vmatpush1.bf16.msra.mxu1 %v2351_v49  ;;  %2282 = vmatprep.subr.bf16.mxu0 %v2281_v50  ;;  %v2299_v49 = vpack.c.bf16 %v465_v41, %v461_v40  ;;  %v2371_v50 = vpack.c.bf16 %v467_v44, %v463_v42  ;;  %v2373_v55 = vpack.c.bf16 %v476_v48, %v472_v47  ;;  %v1971_v40 = vld [vmem:[%s3018_s11 + $0x38] sm:$0xff]  ;;  %v1235_v44 = vld [vmem:[#allocation9 + $0x980] sm:$0xff] }
 0x1e8   : > { %2354 = vmatprep.subr.bf16.mxu1 %v2353_v54  ;;  %v471_v54 = vld [vmem:[#allocation9 + $0x410] sm:$0xff]  ;;  %v2459_v42 = vpack.c.bf16 %v1233_v30, %v1229_v28  ;;  %v1267_v28 = vld [vmem:[#allocation9 + $0xa80] sm:$0xff] }
 0x1e9   : > { %v2375_v63 = vpack.c.bf16 %v475_v56, %v471_v54  ;;  %v1241_v48 = vld [vmem:[#allocation9 + $0x9b0] sm:$0xff]  ;;  %v1243_v56 = vld [vmem:[#allocation9 + $0x9c0] sm:$0xff] }
 0x1ea   : > { %2284 = vmatpush1.bf16.msra.mxu0 %v2283_v60  ;;  %v484_v60 = vld [vmem:[#allocation9 + $0x478] sm:$0xff]  ;;  %v2463_v54 = vpack.c.bf16 %v1241_v48, %v1237_v46  ;;  %v1269_v30 = vld [vmem:[#allocation9 + $0xa90] sm:$0xff]  ;;  %v1279_v46 = vld [vmem:[#allocation9 + $0xae0] sm:$0xff] }
 0x1eb   : > { %2356 = vmatpush1.bf16.msra.mxu1 %v2355_v61  ;;  %2286 = vmatprep.subr.bf16.mxu0 %v2285_v62  ;;  %v338_v61 = vld [vmem:[%s3018_s11] sm:$0xff]  ;;  %v2303_v62 = vpack.c.bf16 %v473_v53, %v469_v52  ;;  %v2377_v4 = vpack.c.bf16 %v484_v60, %v480_v59  ;;  %v2391_v53 = vpack.c.bf16 %v1239_v45, %v1235_v44  ;;  %v1275_v45 = vld [vmem:[#allocation9 + $0xac0] sm:$0xff] }
 0x1ec   : > { %2358 = vmatprep.subr.bf16.mxu1 %v2357_v2  ;;  %v481_v2 = vld [vmem:[#allocation9 + $0x460] sm:$0xff]  ;;  %v1250_v52 = vld [vmem:[#allocation9 + $0x9f8] sm:$0xff]  ;;  %v1249_v60 = vld [vmem:[#allocation9 + $0x9f0] sm:$0xff] }
 0x1ee   : > { %2288 = vmatpush1.bf16.msra.mxu0 %v2287_v8  ;;  %v1222_v8 = vld [vmem:[#allocation9 + $0x918] sm:$0xff] }
 0x1ef   : > { %2360 = vmatpush1.bf16.msra.mxu1 %v2359_v9  ;;  %2290 = vmatprep.subr.bf16.mxu0 %v2289_v10  ;;  %v1226_v9 = vld [vmem:[#allocation9 + $0x938] sm:$0xff]  ;;  %v2307_v10 = vpack.c.bf16 %v481_v2, %v477_v1  ;;  %v2395_v1 = vpack.c.bf16 %v1247_v57, %v1243_v56  ;;  %v2467_v2 = vpack.c.bf16 %v1249_v60, %v1245_v58  ;;  %v1283_v57 = vld [vmem:[#allocation9 + $0xb00] sm:$0xff] }
 0x1f0   : > { %2362 = vmatprep.subr.bf16.mxu1 %v2361_v14  ;;  %v1223_v14 = vld [vmem:[#allocation9 + $0x920] sm:$0xff]  ;;  %v2453_v16 = vpack.c.bf16 %v1226_v9, %v1222_v8  ;;  %v1257_v8 = vld [vmem:[#allocation9 + $0xa30] sm:$0xff]  ;;  %v1260_v9 = vld [vmem:[#allocation9 + $0xa48] sm:$0xff] }
 0x1f1   : > { %v2383_v23 = vpack.c.bf16 %v1223_v14, %v1219_v13  ;;  %v2471_v14 = vpack.c.bf16 %v1257_v8, %v1253_v6  ;;  %v1287_v58 = vld [vmem:[#allocation9 + $0xb20] sm:$0xff] }
 0x1f2   : > { %2292 = vmatpush1.bf16.msra.mxu0 %v2291_v20  ;;  %v1230_v20 = vld [vmem:[#allocation9 + $0x958] sm:$0xff]  ;;  %v1295_v6 = vld [vmem:[#allocation9 + $0xb60] sm:$0xff] }
 0x1f3   : > { %2364 = vmatpush1.bf16.msra.mxu1 %v2363_v21  ;;  %2294 = vmatprep.subr.bf16.mxu0 %v2293_v22  ;;  %v1234_v21 = vld [vmem:[#allocation9 + $0x978] sm:$0xff]  ;;  %v340_v22 = vld [vmem:[%s3018_s11 + $0x10] sm:$0xff] }
 0x1f4   : > { %2366 = vmatprep.subr.bf16.mxu1 %v2365_v26  ;;  %v1227_v26 = vld [vmem:[#allocation9 + $0x940] sm:$0xff]  ;;  %v2457_v29 = vpack.c.bf16 %v1234_v21, %v1230_v20  ;;  %v1265_v20 = vld [vmem:[#allocation9 + $0xa70] sm:$0xff]  ;;  %v1268_v21 = vld [vmem:[#allocation9 + $0xa88] sm:$0xff] }
 0x1f5   : > { %v2387_v41 = vpack.c.bf16 %v1231_v27, %v1227_v26  ;;  %v2475_v26 = vpack.c.bf16 %v1265_v20, %v1261_v18  ;;  %v1303_v18 = vld [vmem:[#allocation9 + $0xba0] sm:$0xff] }
 0x1f6   : > { %2296 = vmatpush1.bf16.msra.mxu0 %v2295_v32  ;;  %v1240_v32 = vld [vmem:[#allocation9 + $0x9a8] sm:$0xff] }
 0x1f7   : > { %2368 = vmatpush1.bf16.msra.mxu1 %v2367_v38  ;;  %2298 = vmatprep.subr.bf16.mxu0 %v2297_v39  ;;  %v1238_v38 = vld [vmem:[#allocation9 + $0x998] sm:$0xff] }
 0x1f8   : > { %2370 = vmatprep.subr.bf16.mxu1 %v2369_v43  ;;  %v1242_v39 = vld [vmem:[#allocation9 + $0x9b8] sm:$0xff]  ;;  %v2389_v43 = vpack.c.bf16 %v1240_v32, %v1236_v31  ;;  %v1273_v32 = vld [vmem:[#allocation9 + $0xab0] sm:$0xff] }
 0x1f9   : > { %v2461_v47 = vpack.c.bf16 %v1242_v39, %v1238_v38  ;;  %v1276_v38 = vld [vmem:[#allocation9 + $0xac8] sm:$0xff] }
 0x1fa   : > { %2300 = vmatpush1.bf16.msra.mxu0 %v2299_v49  ;;  %v1244_v49 = vld [vmem:[#allocation9 + $0x9c8] sm:$0xff] }
 0x1fb   : > { %2372 = vmatpush1.bf16.msra.mxu1 %v2371_v50  ;;  %2302 = vmatprep.subr.bf16.mxu0 %v2301_v51  ;;  %v1248_v50 = vld [vmem:[#allocation9 + $0x9e8] sm:$0xff]  ;;  %v1246_v51 = vld [vmem:[#allocation9 + $0x9d8] sm:$0xff] }
 0x1fc   : > { %2374 = vmatprep.subr.bf16.mxu1 %v2373_v55  ;;  %v2393_v55 = vpack.c.bf16 %v1248_v50, %v1244_v49  ;;  %v2465_v59 = vpack.c.bf16 %v1250_v52, %v1246_v51  ;;  %v1280_v39 = vld [vmem:[#allocation9 + $0xae8] sm:$0xff]  ;;  %v1281_v49 = vld [vmem:[#allocation9 + $0xaf0] sm:$0xff]  ;;  %v1286_v52 = vld [vmem:[#allocation9 + $0xb18] sm:$0xff] }
 0x1fd   : > { %992 = vmatmul.mubr.f32.vlgmr.msra.gmra.mrb[0].mxu0 %v338_v61  ;;  %v2409_v44 = vpack.c.bf16 %v1280_v39, %v1276_v38  ;;  %v1284_v50 = vld [vmem:[#allocation9 + $0xb08] sm:$0xff]  ;;  %v1313_v38 = vld [vmem:[#allocation9 + $0xbf0] sm:$0xff] }
 0x1fe   : > { %2304 = vmatpush1.bf16.msra.mxu0 %v2303_v62  ;;  %1134 = vmatmul.mubr.f32.vlgmr.msra.gmra.mrb[0].mxu1 %v338_v61  ;;  %v1252_v61 = vld [vmem:[#allocation9 + $0xa08] sm:$0xff] }
 0x1ff   : > { %2376 = vmatpush1.bf16.msra.mxu1 %v2375_v63  ;;  %2306 = vmatprep.subr.bf16.mxu0 %v2305_v0  ;;  %v1256_v62 = vld [vmem:[#allocation9 + $0xa28] sm:$0xff]  ;;  %v1254_v63 = vld [vmem:[#allocation9 + $0xa18] sm:$0xff] }
 0x200   : > { %2378 = vmatprep.subr.bf16.mxu1 %v2377_v4  ;;  %1062 = vmatprep.mubr.f32.mxu0 %v2838_v36  ;;  %v1258_v0 = vld [vmem:[#allocation9 + $0xa38] sm:$0xff]  ;;  %v2397_v3 = vpack.c.bf16 %v1256_v62, %v1252_v61  ;;  %v1251_v4 = vld [vmem:[#allocation9 + $0xa00] sm:$0xff]  ;;  %v1288_v51 = vld [vmem:[#allocation9 + $0xb28] sm:$0xff] }
 0x201   : > { %1204 = vmatprep.mubr.f32.mxu1 %v2838_v36  ;;  %v2469_v7 = vpack.c.bf16 %v1258_v0, %v1254_v63  ;;  %v2399_v13 = vpack.c.bf16 %v1255_v5, %v1251_v4  ;;  %v2413_v56 = vpack.c.bf16 %v1288_v51, %v1284_v50  ;;  %v1289_v61 = vld [vmem:[#allocation9 + $0xb30] sm:$0xff]  ;;  %v1292_v62 = vld [vmem:[#allocation9 + $0xb48] sm:$0xff]  ;;  %v1294_v0 = vld [vmem:[#allocation9 + $0xb58] sm:$0xff] }
 0x202   : > { %2308 = vmatpush1.bf16.msra.mxu0 %v2307_v10  ;;  %v1264_v10 = vld [vmem:[#allocation9 + $0xa68] sm:$0xff]  ;;  %v1291_v5 = vld [vmem:[#allocation9 + $0xb40] sm:$0xff]  ;;  %v1321_v50 = vld [vmem:[#allocation9 + $0xc30] sm:$0xff] }
 0x203   : > { %2380 = vmatpush1.bf16.msra.mxu1 %v2379_v11  ;;  %2382 = vmatprep.subr.bf16.mxu0 %v2381_v12  ;;  %v1262_v11 = vld [vmem:[#allocation9 + $0xa58] sm:$0xff]  ;;  %v2401_v15 = vpack.c.bf16 %v1264_v10, %v1260_v9  ;;  %v1296_v63 = vld [vmem:[#allocation9 + $0xb68] sm:$0xff]  ;;  %v1297_v9 = vld [vmem:[#allocation9 + $0xb70] sm:$0xff] }
 0x204   : > { %2454 = vmatprep.subr.bf16.mxu1 %v2453_v16  ;;  %v1266_v12 = vld [vmem:[#allocation9 + $0xa78] sm:$0xff]  ;;  %v1259_v16 = vld [vmem:[#allocation9 + $0xa40] sm:$0xff]  ;;  %v2417_v4 = vpack.c.bf16 %v1296_v63, %v1292_v62  ;;  %v1300_v10 = vld [vmem:[#allocation9 + $0xb88] sm:$0xff] }
 0x205   : > { %1968 = vmatmul.mubr.msk.f32.vlgmr.msra.gmra.mrb[0].mxu0 %vm123_vm0, %v340_v22  ;;  %v2473_v19 = vpack.c.bf16 %v1266_v12, %v1262_v11  ;;  %v1304_v11 = vld [vmem:[#allocation9 + $0xba8] sm:$0xff]  ;;  %v1302_v12 = vld [vmem:[#allocation9 + $0xb98] sm:$0xff]  ;;  %v1329_v62 = vld [vmem:[#allocation9 + $0xc70] sm:$0xff] }
 0x206   : > { %1969 = vmatmul.mubr.msk.f32.vlgmr.msra.gmra.mrb[0].mxu1 %vm123_vm0, %v340_v22  ;;  %2384 = vmatpush1.bf16.msra.mxu0 %v2383_v23  ;;  %v1272_v22 = vld [vmem:[#allocation9 + $0xaa8] sm:$0xff]  ;;  %v1270_v23 = vld [vmem:[#allocation9 + $0xa98] sm:$0xff] }
 0x207   : > { %2456 = vmatpush1.bf16.msra.mxu1 %v2455_v24  ;;  %2386 = vmatprep.subr.bf16.mxu0 %v2385_v25  ;;  %v1274_v24 = vld [vmem:[#allocation9 + $0xab8] sm:$0xff]  ;;  %v2403_v25 = vpack.c.bf16 %v1263_v17, %v1259_v16  ;;  %v2405_v27 = vpack.c.bf16 %v1272_v22, %v1268_v21  ;;  %v2421_v16 = vpack.c.bf16 %v1304_v11, %v1300_v10  ;;  %v1299_v17 = vld [vmem:[#allocation9 + $0xb80] sm:$0xff]  ;;  %v1305_v21 = vld [vmem:[#allocation9 + $0xbb0] sm:$0xff] }
 0x208   : > { %2458 = vmatprep.subr.bf16.mxu1 %v2457_v29  ;;  %1430 = vmatprep.mubr.f32.mxu0 %v1971_v40  ;;  %v1271_v29 = vld [vmem:[#allocation9 + $0xaa0] sm:$0xff]  ;;  %v2477_v31 = vpack.c.bf16 %v1274_v24, %v1270_v23  ;;  %v1308_v22 = vld [vmem:[#allocation9 + $0xbc8] sm:$0xff]  ;;  %v1310_v24 = vld [vmem:[#allocation9 + $0xbd8] sm:$0xff] }
 0x209   : > { %1572 = vmatprep.mubr.f32.mxu1 %v1971_v40  ;;  %v1278_v40 = vld [vmem:[#allocation9 + $0xad8] sm:$0xff]  ;;  %v1312_v23 = vld [vmem:[#allocation9 + $0xbe8] sm:$0xff]  ;;  %v1337_v10 = vld [vmem:[#allocation9 + $0xcb0] sm:$0xff] }
 0x20a   : > { %2388 = vmatpush1.bf16.msra.mxu0 %v2387_v41  ;;  %v1282_v41 = vld [vmem:[#allocation9 + $0xaf8] sm:$0xff]  ;;  %v1316_v39 = vld [vmem:[#allocation9 + $0xc08] sm:$0xff] }
 0x20b   : > { %2460 = vmatpush1.bf16.msra.mxu1 %v2459_v42  ;;  %2390 = vmatprep.subr.bf16.mxu0 %v2389_v43  ;;  %v2407_v42 = vpack.c.bf16 %v1271_v29, %v1267_v28  ;;  %v2479_v43 = vpack.c.bf16 %v1273_v32, %v1269_v30  ;;  %v2481_v48 = vpack.c.bf16 %v1282_v41, %v1278_v40  ;;  %v1307_v29 = vld [vmem:[#allocation9 + $0xbc0] sm:$0xff]  ;;  %v1320_v40 = vld [vmem:[#allocation9 + $0xc28] sm:$0xff]  ;;  %v1318_v41 = vld [vmem:[#allocation9 + $0xc18] sm:$0xff] }
 0x20c   : > { %2462 = vmatprep.subr.bf16.mxu1 %v2461_v47  ;;  %v1277_v47 = vld [vmem:[#allocation9 + $0xad0] sm:$0xff]  ;;  %v2425_v28 = vpack.c.bf16 %v1312_v23, %v1308_v22  ;;  %v1311_v30 = vld [vmem:[#allocation9 + $0xbe0] sm:$0xff]  ;;  %v1324_v51 = vld [vmem:[#allocation9 + $0xc48] sm:$0xff] }
 0x20d   : > { %v1332_v63 = vld [vmem:[#allocation9 + $0xc88] sm:$0xff]  ;;  %v1345_v22 = vld [vmem:[#allocation9 + $0xcf0] sm:$0xff] }
 0x20e   : > { %2392 = vmatpush1.bf16.msra.mxu0 %v2391_v53  ;;  %v1290_v53 = vld [vmem:[#allocation9 + $0xb38] sm:$0xff]  ;;  %v1340_v11 = vld [vmem:[#allocation9 + $0xcc8] sm:$0xff] }
 0x20f   : > { %2464 = vmatpush1.bf16.msra.mxu1 %v2463_v54  ;;  %2394 = vmatprep.subr.bf16.mxu0 %v2393_v55  ;;  %v2411_v54 = vpack.c.bf16 %v1279_v46, %v1275_v45  ;;  %v2483_v55 = vpack.c.bf16 %v1281_v49, %v1277_v47  ;;  %v2485_v60 = vpack.c.bf16 %v1290_v53, %v1286_v52  ;;  %v1315_v46 = vld [vmem:[#allocation9 + $0xc00] sm:$0xff]  ;;  %v1328_v52 = vld [vmem:[#allocation9 + $0xc68] sm:$0xff]  ;;  %v1326_v53 = vld [vmem:[#allocation9 + $0xc58] sm:$0xff] }
 0x210   : > { %2466 = vmatprep.subr.bf16.mxu1 %v2465_v59  ;;  %v1285_v59 = vld [vmem:[#allocation9 + $0xb10] sm:$0xff]  ;;  %v2429_v45 = vpack.c.bf16 %v1320_v40, %v1316_v39  ;;  %v1319_v47 = vld [vmem:[#allocation9 + $0xc20] sm:$0xff]  ;;  %v1348_v23 = vld [vmem:[#allocation9 + $0xd08] sm:$0xff] }
 0x211   : > { %v1353_v39 = vld [vmem:[#allocation9 + $0xd30] sm:$0xff]  ;;  %v1356_v40 = vld [vmem:[#allocation9 + $0xd48] sm:$0xff] }
 0x212   : > { %2396 = vmatpush1.bf16.msra.mxu0 %v2395_v1  ;;  %v1298_v1 = vld [vmem:[#allocation9 + $0xb78] sm:$0xff] }
 0x213   : > { %2468 = vmatpush1.bf16.msra.mxu1 %v2467_v2  ;;  %2398 = vmatprep.subr.bf16.mxu0 %v2397_v3  ;;  %v2415_v2 = vpack.c.bf16 %v1287_v58, %v1283_v57  ;;  %v2487_v3 = vpack.c.bf16 %v1289_v61, %v1285_v59  ;;  %v2489_v8 = vpack.c.bf16 %v1298_v1, %v1294_v0  ;;  %v1323_v58 = vld [vmem:[#allocation9 + $0xc40] sm:$0xff]  ;;  %v1336_v0 = vld [vmem:[#allocation9 + $0xca8] sm:$0xff]  ;;  %v1334_v1 = vld [vmem:[#allocation9 + $0xc98] sm:$0xff] }
 0x214   : > { %2470 = vmatprep.subr.bf16.mxu1 %v2469_v7  ;;  %v1293_v7 = vld [vmem:[#allocation9 + $0xb50] sm:$0xff]  ;;  %v2433_v57 = vpack.c.bf16 %v1328_v52, %v1324_v51  ;;  %v1327_v59 = vld [vmem:[#allocation9 + $0xc60] sm:$0xff] }
 0x215   : > { %v1361_v52 = vld [vmem:[#allocation9 + $0xd70] sm:$0xff] }
 0x216   : > { %2400 = vmatpush1.bf16.msra.mxu0 %v2399_v13  ;;  %v1306_v13 = vld [vmem:[#allocation9 + $0xbb8] sm:$0xff] }
 0x217   : > { %2472 = vmatpush1.bf16.msra.mxu1 %v2471_v14  ;;  %2402 = vmatprep.subr.bf16.mxu0 %v2401_v15  ;;  %v2419_v14 = vpack.c.bf16 %v1295_v6, %v1291_v5  ;;  %v2491_v15 = vpack.c.bf16 %v1297_v9, %v1293_v7  ;;  %v2493_v20 = vpack.c.bf16 %v1306_v13, %v1302_v12  ;;  %v1331_v6 = vld [vmem:[#allocation9 + $0xc80] sm:$0xff]  ;;  %v1344_v12 = vld [vmem:[#allocation9 + $0xce8] sm:$0xff]  ;;  %v1342_v13 = vld [vmem:[#allocation9 + $0xcd8] sm:$0xff] }
 0x218   : > { %2474 = vmatprep.subr.bf16.mxu1 %v2473_v19  ;;  %v1301_v19 = vld [vmem:[#allocation9 + $0xb90] sm:$0xff]  ;;  %v2437_v5 = vpack.c.bf16 %v1336_v0, %v1332_v63  ;;  %v1335_v7 = vld [vmem:[#allocation9 + $0xca0] sm:$0xff] }
 0x219   : > { %v1720_v0 = vld [vmem:[%s3037_s6 + $0x108] sm:$0xff] }
 0x21a   : > { %2404 = vmatpush1.bf16.msra.mxu0 %v2403_v25  ;;  %v1314_v25 = vld [vmem:[#allocation9 + $0xbf8] sm:$0xff] }
 0x21b   : > { %2476 = vmatpush1.bf16.msra.mxu1 %v2475_v26  ;;  %2406 = vmatprep.subr.bf16.mxu0 %v2405_v27  ;;  %v2423_v26 = vpack.c.bf16 %v1303_v18, %v1299_v17  ;;  %v2495_v27 = vpack.c.bf16 %v1305_v21, %v1301_v19  ;;  %v2497_v32 = vpack.c.bf16 %v1314_v25, %v1310_v24  ;;  %v1339_v18 = vld [vmem:[#allocation9 + $0xcc0] sm:$0xff]  ;;  %v1352_v24 = vld [vmem:[#allocation9 + $0xd28] sm:$0xff]  ;;  %v1350_v25 = vld [vmem:[#allocation9 + $0xd18] sm:$0xff] }
 0x21c   : > { %2478 = vmatprep.subr.bf16.mxu1 %v2477_v31  ;;  %v1309_v31 = vld [vmem:[#allocation9 + $0xbd0] sm:$0xff]  ;;  %v2441_v17 = vpack.c.bf16 %v1344_v12, %v1340_v11  ;;  %v1343_v19 = vld [vmem:[#allocation9 + $0xce0] sm:$0xff] }
 0x21d   : > { %v1721_v11 = vld [vmem:[%s3037_s6 + $0x110] sm:$0xff]  ;;  %v1722_v12 = vld [vmem:[%s3037_s6 + $0x118] sm:$0xff] }
 0x21e   : > { %2408 = vmatpush1.bf16.msra.mxu0 %v2407_v42  ;;  %v1322_v42 = vld [vmem:[#allocation9 + $0xc38] sm:$0xff] }
 0x21f   : > { %2480 = vmatpush1.bf16.msra.mxu1 %v2479_v43  ;;  %2410 = vmatprep.subr.bf16.mxu0 %v2409_v44  ;;  %v2427_v43 = vpack.c.bf16 %v1311_v30, %v1307_v29  ;;  %v2499_v44 = vpack.c.bf16 %v1313_v38, %v1309_v31  ;;  %v2501_v49 = vpack.c.bf16 %v1322_v42, %v1318_v41  ;;  %v1347_v30 = vld [vmem:[#allocation9 + $0xd00] sm:$0xff]  ;;  %v1360_v41 = vld [vmem:[#allocation9 + $0xd68] sm:$0xff]  ;;  %v1358_v42 = vld [vmem:[#allocation9 + $0xd58] sm:$0xff] }
 0x220   : > { %2482 = vmatprep.subr.bf16.mxu1 %v2481_v48  ;;  %v1317_v48 = vld [vmem:[#allocation9 + $0xc10] sm:$0xff]  ;;  %v2445_v29 = vpack.c.bf16 %v1352_v24, %v1348_v23  ;;  %v1351_v31 = vld [vmem:[#allocation9 + $0xd20] sm:$0xff] }
 0x221   : > { %v1724_v24 = vld [vmem:[%s3037_s6 + $0x128] sm:$0xff] }
 0x222   : > { %2412 = vmatpush1.bf16.msra.mxu0 %v2411_v54  ;;  %v1330_v54 = vld [vmem:[#allocation9 + $0xc78] sm:$0xff] }
 0x223   : > { %2484 = vmatpush1.bf16.msra.mxu1 %v2483_v55  ;;  %2414 = vmatprep.subr.bf16.mxu0 %v2413_v56  ;;  %v2431_v55 = vpack.c.bf16 %v1319_v47, %v1315_v46  ;;  %v2503_v56 = vpack.c.bf16 %v1321_v50, %v1317_v48  ;;  %v2505_v61 = vpack.c.bf16 %v1330_v54, %v1326_v53  ;;  %v1355_v48 = vld [vmem:[#allocation9 + $0xd40] sm:$0xff]  ;;  %v1357_v50 = vld [vmem:[#allocation9 + $0xd50] sm:$0xff] }
 0x224   : > { %2486 = vmatprep.subr.bf16.mxu1 %v2485_v60  ;;  %v1325_v60 = vld [vmem:[#allocation9 + $0xc50] sm:$0xff]  ;;  %v2449_v47 = vpack.c.bf16 %v1360_v41, %v1356_v40  ;;  %v1704_v54 = vld [vmem:[%s3037_s6 + $0x88] sm:$0xff] }
 0x225   : > { %v1703_v53 = vld [vmem:[%s3037_s6 + $0x80] sm:$0xff]  ;;  %v1726_v41 = vld [vmem:[%s3037_s6 + $0x138] sm:$0xff] }
 0x226   : > { %2416 = vmatpush1.bf16.msra.mxu0 %v2415_v2  ;;  %v1338_v2 = vld [vmem:[#allocation9 + $0xcb8] sm:$0xff] }
 0x227   : > { %2488 = vmatpush1.bf16.msra.mxu1 %v2487_v3  ;;  %2418 = vmatprep.subr.bf16.mxu0 %v2417_v4  ;;  %v2435_v3 = vpack.c.bf16 %v1327_v59, %v1323_v58  ;;  %v2507_v4 = vpack.c.bf16 %v1329_v62, %v1325_v60  ;;  %v2509_v9 = vpack.c.bf16 %v1338_v2, %v1334_v1  ;;  %v1687_v60 = vld [vmem:[%s3037_s6] sm:$0xff]  ;;  %v1705_v1 = vld [vmem:[%s3037_s6 + $0x90] sm:$0xff]  ;;  %v1706_v2 = vld [vmem:[%s3037_s6 + $0x98] sm:$0xff] }
 0x228   : > { %2490 = vmatprep.subr.bf16.mxu1 %v2489_v8  ;;  %v1333_v8 = vld [vmem:[#allocation9 + $0xc90] sm:$0xff]  ;;  %v2523_v58 = vpack.c.bf16 %v1361_v52, %v1357_v50  ;;  %v2525_v59 = vpack.c.bf16 %v1704_v54, %v1703_v53  ;;  %v1696_v50 = vld [vmem:[%s3037_s6 + $0x48] sm:$0xff]  ;;  %v1713_v54 = vld [vmem:[%s3037_s6 + $0xd0] sm:$0xff] }
 0x229   : > { %v1719_v62 = vld [vmem:[%s3037_s6 + $0x100] sm:$0xff]  ;;  %v1728_v53 = vld [vmem:[%s3037_s6 + $0x148] sm:$0xff] }
 0x22a   : > { %2420 = vmatpush1.bf16.msra.mxu0 %v2419_v14  ;;  %v1346_v14 = vld [vmem:[#allocation9 + $0xcf8] sm:$0xff] }
 0x22b   : > { %2492 = vmatpush1.bf16.msra.mxu1 %v2491_v15  ;;  %2422 = vmatprep.subr.bf16.mxu0 %v2421_v16  ;;  %v2439_v15 = vpack.c.bf16 %v1335_v7, %v1331_v6  ;;  %v2511_v16 = vpack.c.bf16 %v1337_v10, %v1333_v8  ;;  %v2513_v21 = vpack.c.bf16 %v1346_v14, %v1342_v13  ;;  %v1690_v10 = vld [vmem:[%s3037_s6 + $0x18] sm:$0xff]  ;;  %v1707_v13 = vld [vmem:[%s3037_s6 + $0xa0] sm:$0xff]  ;;  %v1708_v14 = vld [vmem:[%s3037_s6 + $0xa8] sm:$0xff] }
 0x22c   : > { %2494 = vmatprep.subr.bf16.mxu1 %v2493_v20  ;;  %v1341_v20 = vld [vmem:[#allocation9 + $0xcd0] sm:$0xff]  ;;  %v2559_v7 = vpack.c.bf16 %v1720_v0, %v1719_v62  ;;  %v2529_v8 = vpack.c.bf16 %v1706_v2, %v1705_v1 }
 0x22d   : > { %v1698_v62 = vld [vmem:[%s3037_s6 + $0x58] sm:$0xff]  ;;  %v1715_v2 = vld [vmem:[%s3037_s6 + $0xe0] sm:$0xff] }
 0x22e   : > { %2424 = vmatpush1.bf16.msra.mxu0 %v2423_v26  ;;  %v1354_v26 = vld [vmem:[#allocation9 + $0xd38] sm:$0xff]  ;;  %v1730_v1 = vld [vmem:[%s3037_s6 + $0x158] sm:$0xff] }
 0x22f   : > { %2496 = vmatpush1.bf16.msra.mxu1 %v2495_v27  ;;  %2426 = vmatprep.subr.bf16.mxu0 %v2425_v28  ;;  %v2443_v27 = vpack.c.bf16 %v1343_v19, %v1339_v18  ;;  %v2515_v28 = vpack.c.bf16 %v1345_v22, %v1341_v20  ;;  %v2517_v38 = vpack.c.bf16 %v1354_v26, %v1350_v25  ;;  %v1691_v20 = vld [vmem:[%s3037_s6 + $0x20] sm:$0xff]  ;;  %v1709_v25 = vld [vmem:[%s3037_s6 + $0xb0] sm:$0xff]  ;;  %v1710_v26 = vld [vmem:[%s3037_s6 + $0xb8] sm:$0xff] }
 0x230   : > { %2498 = vmatprep.subr.bf16.mxu1 %v2497_v32  ;;  %v1349_v32 = vld [vmem:[#allocation9 + $0xd10] sm:$0xff]  ;;  %v2563_v18 = vpack.c.bf16 %v1722_v12, %v1721_v11  ;;  %v2533_v19 = vpack.c.bf16 %v1708_v14, %v1707_v13  ;;  %v1700_v11 = vld [vmem:[%s3037_s6 + $0x68] sm:$0xff] }
 0x231   : > { %v2519_v46 = vpack.c.bf16 %v1353_v39, %v1349_v32  ;;  %v1723_v22 = vld [vmem:[%s3037_s6 + $0x120] sm:$0xff]  ;;  %v1693_v32 = vld [vmem:[%s3037_s6 + $0x30] sm:$0xff]  ;;  %v1732_v13 = vld [vmem:[%s3037_s6 + $0x168] sm:$0xff] }
 0x232   : > { %2428 = vmatpush1.bf16.msra.mxu0 %v2427_v43  ;;  %v1362_v43 = vld [vmem:[#allocation9 + $0xd78] sm:$0xff]  ;;  %v1725_v39 = vld [vmem:[%s3037_s6 + $0x130] sm:$0xff] }
 0x233   : > { %2500 = vmatpush1.bf16.msra.mxu1 %v2499_v44  ;;  %2430 = vmatprep.subr.bf16.mxu0 %v2429_v45  ;;  %v1970_v44 = vld [vmem:[%s3018_s11 + $0x30] sm:$0xff]  ;;  %v2447_v45 = vpack.c.bf16 %v1351_v31, %v1347_v30  ;;  %v2521_v51 = vpack.c.bf16 %v1362_v43, %v1358_v42  ;;  %v2567_v30 = vpack.c.bf16 %v1724_v24, %v1723_v22  ;;  %v1711_v42 = vld [vmem:[%s3037_s6 + $0xc0] sm:$0xff]  ;;  %v1712_v43 = vld [vmem:[%s3037_s6 + $0xc8] sm:$0xff] }
 0x234   : > { %2502 = vmatprep.subr.bf16.mxu1 %v2501_v49  ;;  %v1359_v49 = vld [vmem:[#allocation9 + $0xd60] sm:$0xff]  ;;  %v2537_v31 = vpack.c.bf16 %v1710_v26, %v1709_v25  ;;  %v1734_v25 = vld [vmem:[%s3037_s6 + $0x178] sm:$0xff] }
 0x235   : > { %v1733_v24 = vld [vmem:[%s3037_s6 + $0x170] sm:$0xff] }
 0x236   : > { %2432 = vmatpush1.bf16.msra.mxu0 %v2431_v55  ;;  %v1735_v55 = vld [vmem:[%s3037_s6 + $0x180] sm:$0xff]  ;;  %v2587_v26 = vpack.c.bf16 %v1734_v25, %v1733_v24 }
 0x237   : > { %2504 = vmatpush1.bf16.msra.mxu1 %v2503_v56  ;;  %2434 = vmatprep.subr.bf16.mxu0 %v2433_v57  ;;  %v1736_v56 = vld [vmem:[%s3037_s6 + $0x188] sm:$0xff]  ;;  %v2451_v57 = vpack.c.bf16 %v1359_v49, %v1355_v48  ;;  %v2541_v48 = vpack.c.bf16 %v1712_v43, %v1711_v42  ;;  %v1695_v49 = vld [vmem:[%s3037_s6 + $0x40] sm:$0xff] }
 0x238   : > { %2506 = vmatprep.subr.bf16.mxu1 %v2505_v61  ;;  %v1688_v61 = vld [vmem:[%s3037_s6 + $0x8] sm:$0xff]  ;;  %v2557_v63 = vpack.c.bf16 %v1736_v56, %v1735_v55  ;;  %v1714_v55 = vld [vmem:[%s3037_s6 + $0xd8] sm:$0xff]  ;;  %v1745_v56 = vld [vmem:[%s3037_s6 + $0x1d0] sm:$0xff] }
 0x239   : > { %v2527_v6 = vpack.c.bf16 %v1688_v61, %v1687_v60  ;;  %v2545_v60 = vpack.c.bf16 %v1714_v55, %v1713_v54  ;;  %v1697_v61 = vld [vmem:[%s3037_s6 + $0x50] sm:$0xff] }
 0x23a   : > { %2436 = vmatpush1.bf16.msra.mxu0 %v2435_v3  ;;  %v1737_v3 = vld [vmem:[%s3037_s6 + $0x190] sm:$0xff] }
 0x23b   : > { %2508 = vmatpush1.bf16.msra.mxu1 %v2507_v4  ;;  %2438 = vmatprep.subr.bf16.mxu0 %v2437_v5  ;;  %v1738_v4 = vld [vmem:[%s3037_s6 + $0x198] sm:$0xff]  ;;  %v1972_v5 = vld [vmem:[%s3018_s11 + $0x40] sm:$0xff] }
 0x23c   : > { %2510 = vmatprep.subr.bf16.mxu1 %v2509_v9  ;;  %v1689_v9 = vld [vmem:[%s3037_s6 + $0x10] sm:$0xff] }
 0x23e   : > { %2440 = vmatpush1.bf16.msra.mxu0 %v2439_v15  ;;  %v1739_v15 = vld [vmem:[%s3037_s6 + $0x1a0] sm:$0xff] }
 0x23f   : > { %2512 = vmatpush1.bf16.msra.mxu1 %v2511_v16  ;;  %2442 = vmatprep.subr.bf16.mxu0 %v2441_v17  ;;  %v1740_v16 = vld [vmem:[%s3037_s6 + $0x1a8] sm:$0xff]  ;;  %v2531_v17 = vpack.c.bf16 %v1690_v10, %v1689_v9  ;;  %v1699_v10 = vld [vmem:[%s3037_s6 + $0x60] sm:$0xff] }
 0x240   : > { %2514 = vmatprep.subr.bf16.mxu1 %v2513_v21  ;;  %v1692_v21 = vld [vmem:[%s3037_s6 + $0x28] sm:$0xff]  ;;  %v2565_v23 = vpack.c.bf16 %v1740_v16, %v1739_v15  ;;  %v2551_v12 = vpack.c.bf16 %v1700_v11, %v1699_v10  ;;  %v1717_v15 = vld [vmem:[%s3037_s6 + $0xf0] sm:$0xff]  ;;  %v1718_v16 = vld [vmem:[%s3037_s6 + $0xf8] sm:$0xff] }
 0x242   : > { %2444 = vmatpush1.bf16.msra.mxu0 %v2443_v27  ;;  %v1741_v27 = vld [vmem:[%s3037_s6 + $0x1b0] sm:$0xff] }
 0x243   : > { %2516 = vmatpush1.bf16.msra.mxu1 %v2515_v28  ;;  %2446 = vmatprep.subr.bf16.mxu0 %v2445_v29  ;;  %v1742_v28 = vld [vmem:[%s3037_s6 + $0x1b8] sm:$0xff]  ;;  %v2535_v29 = vpack.c.bf16 %v1692_v21, %v1691_v20  ;;  %v1701_v20 = vld [vmem:[%s3037_s6 + $0x70] sm:$0xff] }
 0x244   : > { %2518 = vmatprep.subr.bf16.mxu1 %v2517_v38  ;;  %v1694_v38 = vld [vmem:[%s3037_s6 + $0x38] sm:$0xff]  ;;  %v2569_v40 = vpack.c.bf16 %v1742_v28, %v1741_v27  ;;  %v1654_v27 = vld [vmem:[#allocation10] sm:$0xf]  ;;  %v1670_v28 = vsub.s32 3, %v2994_v33 }
 0x245   : > { %1431 = vmatmul.mubr.f32.vlgmr.msra.gmra.mrb[0].mxu0 %v1970_v44  ;;  %v1702_v21 = vld [vmem:[%s3037_s6 + $0x78] sm:$0xff] }
 0x246   : > { %1573 = vmatmul.mubr.f32.vlgmr.msra.gmra.mrb[0].mxu1 %v1970_v44  ;;  %2448 = vmatpush1.bf16.msra.mxu0 %v2447_v45  ;;  %v1743_v44 = vld [vmem:[%s3037_s6 + $0x1c0] sm:$0xff]  ;;  %v1744_v45 = vld [vmem:[%s3037_s6 + $0x1c8] sm:$0xff] }
 0x247   : > { %2520 = vmatpush1.bf16.msra.mxu1 %v2519_v46  ;;  %2450 = vmatprep.subr.bf16.mxu0 %v2449_v47  ;;  %v2539_v46 = vpack.c.bf16 %v1694_v38, %v1693_v32  ;;  %v2571_v47 = vpack.c.bf16 %v1726_v41, %v1725_v39  ;;  %v2573_v52 = vpack.c.bf16 %v1744_v45, %v1743_v44 }
 0x248   : > { %2522 = vmatprep.subr.bf16.mxu1 %v2521_v51  ;;  %1501 = vmatprep.mubr.f32.mxu0 %v2838_v36  ;;  %v1727_v51 = vld [vmem:[%s3037_s6 + $0x140] sm:$0xff]  ;;  %v1671_v32 = vrot.slane %v1654_v27, %v1670_v28 }
 0x249   : > { %1643 = vmatprep.mubr.f32.mxu1 %v2838_v36  ;;  %v2561_v36 = vpack.c.bf16 %v1738_v4, %v1737_v3  ;;  %v1716_v3 = vld [vmem:[%s3037_s6 + $0xe8] sm:$0xff]  ;;  %v1747_v4 = vld [vmem:[%s3037_s6 + $0x1e0] sm:$0xff] }
 0x24a   : > { %2452 = vmatpush1.bf16.msra.mxu0 %v2451_v57  ;;  %v1746_v57 = vld [vmem:[%s3037_s6 + $0x1d8] sm:$0xff] }
 0x24b   : > { %2524 = vmatpush1.bf16.msra.mxu1 %v2523_v58  ;;  %2526 = vmatprep.subr.bf16.mxu0 %v2525_v59  ;;  %v2543_v58 = vpack.c.bf16 %v1696_v50, %v1695_v49  ;;  %v2575_v59 = vpack.c.bf16 %v1728_v53, %v1727_v51  ;;  %v2577_v0 = vpack.c.bf16 %v1746_v57, %v1745_v56  ;;  %v1684_v56 = vld [vmem:[#allocation3] sm:$0xff] }
 0x24c   : > { %2558 = vmatprep.subr.bf16.mxu1 %v2557_v63  ;;  %v1729_v63 = vld [vmem:[%s3037_s6 + $0x150] sm:$0xff] }
 0x24d   : > { %1973 = vmatmul.mubr.msk.f32.vlgmr.msra.gmra.mrb[0].mxu0 %vm123_vm0, %v1972_v5 }
 0x24e   : > { %1974 = vmatmul.mubr.msk.f32.vlgmr.msra.gmra.mrb[0].mxu1 %vm123_vm0, %v1972_v5  ;;  %2528 = vmatpush3.bf16.msra.mxu0 %v2527_v6  ;;  %v1748_v5 = vld [vmem:[%s3037_s6 + $0x1e8] sm:$0xff]  ;;  %v2547_v6 = vpack.c.bf16 %v1698_v62, %v1697_v61  ;;  %v1977_v62 = vld [vmem:[#allocation15] ss:$0 sm:$0xff] (%p331_p1) }
 0x24f   : > { %2560 = vmatpush3.bf16.msra.mxu1 %v2559_v7  ;;  %2530 = vmatprep.subr.bf16.mxu0 %v2529_v8  ;;  %v2579_v7 = vpack.c.bf16 %v1730_v1, %v1729_v63  ;;  %v2549_v8 = vpack.c.bf16 %v1716_v3, %v1715_v2  ;;  %v2581_v9 = vpack.c.bf16 %v1748_v5, %v1747_v4  ;;  %v1978_v1 = vld [vmem:[#allocation4] ss:$0 sm:$0xff] (%p331_p1) }
 0x250   : > { %2562 = vmatprep.subr.bf16.mxu1 %v2561_v36  ;;  %v1731_v36 = vld [vmem:[%s3037_s6 + $0x160] sm:$0xff] }
 0x251   : > { %v2583_v14 = vpack.c.bf16 %v1732_v13, %v1731_v36 }
 0x252   : > { %2532 = vmatpush3.bf16.msra.mxu0 %v2531_v17  ;;  %v1749_v17 = vld [vmem:[%s3037_s6 + $0x1f0] sm:$0xff] }
 0x253   : > { %2564 = vmatpush3.bf16.msra.mxu1 %v2563_v18  ;;  %2534 = vmatprep.subr.bf16.mxu0 %v2533_v19  ;;  %v2553_v18 = vpack.c.bf16 %v1718_v16, %v1717_v15  ;;  %v1750_v19 = vld [vmem:[%s3037_s6 + $0x1f8] sm:$0xff] }
 0x254   : > { %2566 = vmatprep.subr.bf16.mxu1 %v2565_v23  ;;  %v2585_v22 = vpack.c.bf16 %v1750_v19, %v1749_v17  ;;  %v2555_v23 = vpack.c.bf16 %v1702_v21, %v1701_v20 }
 0x256   : > { %2536 = vmatpush3.bf16.msra.mxu0 %v2535_v29  ;;  %v1659_v29 = vrot.slane %v1654_v27, %v161_v34 }
 0x257   : > { %2568 = vmatpush3.bf16.msra.mxu1 %v2567_v30  ;;  %2538 = vmatprep.subr.bf16.mxu0 %v2537_v31  ;;  %v1667_v30 = vrot.slane %v1654_v27, %v169_v35  ;;  %v1663_v31 = vrot.slane %v1654_v27, %v165_v37 }
 0x258   : > { %2570 = vmatprep.subr.bf16.mxu1 %v2569_v40 }
 0x25a   : > { %2540 = vmatpush3.bf16.msra.mxu0 %v2539_v46 }
 0x25b   : > { %2572 = vmatpush3.bf16.msra.mxu1 %v2571_v47  ;;  %2542 = vmatprep.subr.bf16.mxu0 %v2541_v48 }
 0x25c   : > { %2574 = vmatprep.subr.bf16.mxu1 %v2573_v52 }
 0x25e   : > { %2544 = vmatpush3.bf16.msra.mxu0 %v2543_v58 }
 0x25f   : > { %2576 = vmatpush3.bf16.msra.mxu1 %v2575_v59  ;;  %2546 = vmatprep.subr.bf16.mxu0 %v2545_v60  ;;  %v1976_v60 = vld [vmem:[#allocation13] ss:$0 sm:$0xff] (%p331_p1) }
 0x260   : > { %2578 = vmatprep.subr.bf16.mxu1 %v2577_v0 }
 0x262   : > { %2548 = vmatpush3.bf16.msra.mxu0 %v2547_v6 }
 0x263   : > { %2580 = vmatpush3.bf16.msra.mxu1 %v2579_v7  ;;  %2550 = vmatprep.subr.bf16.mxu0 %v2549_v8 }
 0x264   : > { %2582 = vmatprep.subr.bf16.mxu1 %v2581_v9 }
 0x266   : > { %2552 = vmatpush3.bf16.msra.mxu0 %v2551_v12 }
 0x267   : > { %2584 = vmatpush3.bf16.msra.mxu1 %v2583_v14  ;;  %2554 = vmatprep.subr.bf16.mxu0 %v2553_v18 }
 0x268   : > { %2586 = vmatprep.subr.bf16.mxu1 %v2585_v22 }
 0x26a   : > { %2556 = vmatpush3.bf16.msra.mxu0 %v2555_v23 }
 0x26b   : > { %2588 = vmatpush3.bf16.msra.mxu1 %v2587_v26 }
 0x320   : > { %v1503_v38 = vpop.f32.mrb[0].mxu0 }
 0x321   : > { %v1676_v39 = vadd.f32 %v1659_v29, %v1503_v38  ;;  %v1645_v40 = vpop.f32.mrb[0].mxu1  ;;  %v1505_v41 = vpop.f32.mrb[1].mxu0 }
 0x322   : > { %v1678_v42 = vadd.f32 %v1667_v30, %v1645_v40  ;;  %v1677_v43 = vadd.f32 %v1663_v31, %v1505_v41  ;;  %v1647_v44 = vpop.f32.mrb[1].mxu1 }
 0x323   : > { %v1679_v45 = vadd.f32 %v1671_v32, %v1647_v44  ;;  %v1680_v47 = vmax.f32 %v1676_v39, 0.0 }
 0x324   : > { %v1681_v46 = vmax.f32 %v1677_v43, 0.0  ;;  %v1682_v49 = vmax.f32 %v1678_v42, 0.0 }
 0x325   : > { %v1683_v48 = vmax.f32 %v1679_v45, 0.0 }
 0x326   : > { %1815 = vmatprep.mubr.f32.mxu0 %v1681_v46 }
 0x327   : > { %1885 = vmatprep.mubr.f32.mxu1 %v1683_v48  ;;  %1816 = vmatmul.mubr.f32.vlgmr.msra.gmra.mrb[2].mxu0 %v1680_v47 }
 0x328   : > { %1886 = vmatmul.mubr.f32.vlgmr.msra.gmra.mrb[2].mxu1 %v1682_v49 }
 0x3fa   : > { %v2019_v50 = vpop.f32.mrb[2].mxu0 }
 0x3fb   : > { %v2054_v51 = vpop.f32.mrb[2].mxu1  ;;  %v2020_v52 = vpop.f32.mrb[3].mxu0 }
 0x3fc   : > { %v2021_v53 = vadd.f32 %v2020_v52, %v2019_v50  ;;  %v2055_v54 = vpop.f32.mrb[3].mxu1 }
 0x3fd   : > { %v2056_v55 = vadd.f32 %v2055_v54, %v2054_v51  ;;  %333 = sbr.rel (!%p331_p1) target bundleno = 369 (0x171), region = 118 }
 0x3ff   : > { %v1888_v57 = vadd.f32 %v2056_v55, %v2021_v53 }
 0x401   : > { %v1891_v58 = vadd.f32 %v1888_v57, %v1684_v56 }
 0x403   : > { %1892 = vst [vmem:[#allocation3] sm:$0xff] %v1891_v58 }
 0x40a   :  { %v1893_v59 = vld [vmem:[#allocation3] sm:$0xff] }
 0x40b   :  { %v1901_v61 = vadd.f32 %v1976_v60, %v1893_v59 }
 0x40d   :  { %v1902_v63 = vmax.f32 %v1901_v61, 0.0 }
 0x40f   :  { %v1910_v0 = vmul.f32 %v1977_v62, %v1902_v63 }
 0x411   :  { %1911 = vadd.xlane.f32.xlu0 %v1910_v0 }
 0x49e   :  { %v1912_v2 = vpop.xlane.xlu0 %1911 }
 0x49f   :  { %v1920_v3 = vadd.f32 %v1978_v1, %v1912_v2 }
 0x4a1   :  { %1922 = vst.msk [vmem:[%s3130_s9] sm:$0xff] %vm1921_vm3, %v1920_v3 }
 0x4a2   :  { %1927 = vsyncpa [#allocation6], 1 }
 0x4a3   :  { %1928 = vsyncpa [#allocation8], 1 }
 0x4a4   :  { %1929 = vsyncpa [#allocation11], 1 }
 0x4a5   :  { %1930 = vsyncpa [#allocation14], 1 }

</bundles_post_ra>
